<compile_context>
chip_gen: v7x
topology: tpu7x:2x2x1
jax: 0.10.0
libtpu: 0.0.40
codegen_flags: <defaults>
</compile_context>

<pallas_src>
import jax
import jax.numpy as jnp
from jax.experimental import pallas as pl
from jax.experimental.pallas import tpu as pltpu

BN_EPS = 1e-5


# ---------------------------------------------------------------------------
# Single fused kernel: one grid step processes a chunk of G graphs.
# ---------------------------------------------------------------------------
def _fused_kernel(a_ref, x_ref, sf_ref,
                  wg1_ref, bg1_ref, wg2_ref, bg2_ref,
                  pool_ref, ehg_ref, esf_ref,
                  wf1_ref, bf1_ref, wf2_ref, bf2_ref, wf3_ref, bf3_ref,
                  out_ref):
    f32 = jnp.float32
    bf16 = jnp.bfloat16

    a = a_ref[0]                          # (G, N, N)   f32 row-normalized adjacency
    x = x_ref[0].astype(f32)              # (G, N, Din) bf16 -> f32
    sf = sf_ref[0]                        # (G, S)      bf16 self features
    G, N, _ = a.shape

    # --- GCN layer 1: per-graph mean aggregation (batched MXU) + Linear + ReLU ---
    h = jnp.einsum('gvu,guf->gvf', a, x, preferred_element_type=f32)      # (G, N, Din)
    h = h.reshape(G * N, h.shape[-1])                                     # (GN, Din)
    h = jnp.maximum(
        jnp.dot(h.astype(bf16), wg1_ref[...], preferred_element_type=f32)
        + bg1_ref[...], 0.0)                                              # (GN, H1p)

    # --- GCN layer 2 ---
    h = jnp.einsum('gvu,guf->gvf', a, h.reshape(G, N, h.shape[-1]),
                   preferred_element_type=f32)                            # (G, N, H1p)
    h = h.reshape(G * N, h.shape[-1])
    h = jnp.maximum(
        jnp.dot(h.astype(bf16), wg2_ref[...], preferred_element_type=f32)
        + bg2_ref[...], 0.0)                                              # (GN, H2p)

    # --- dgl.mean_nodes: per-graph mean pooling via MXU matmul (exact f32 1/N) ---
    hg = jnp.dot(pool_ref[...], h, preferred_element_type=f32)            # (G, H2p)

    # --- torch.bmm(hg.unsqueeze(2), self_feat.unsqueeze(1)).view(B, -1) ---
    # expansion matmuls (exact 0/1 constants) avoid any in-kernel lane reshape
    hg_e = jnp.dot(hg.astype(bf16), ehg_ref[...], preferred_element_type=f32)  # (G, KSp)
    sf_e = jnp.dot(sf, esf_ref[...], preferred_element_type=f32)               # (G, KSp)
    xk = hg_e * sf_e

    # --- MLP head (eval-mode BN folded into weights, dropout = identity) ---
    o = jnp.maximum(
        jnp.dot(xk.astype(bf16), wf1_ref[...], preferred_element_type=f32)
        + bf1_ref[...], 0.0)                                              # (G, HID1p)
    o = jnp.maximum(
        jnp.dot(o.astype(bf16), wf2_ref[...], preferred_element_type=f32)
        + bf2_ref[...], 0.0)                                              # (G, HID2p)
    out_ref[0] = (jnp.dot(o.astype(bf16), wf3_ref[...], preferred_element_type=f32)
                  + bf3_ref[...])                                         # (G, Dp)


# ---------------------------------------------------------------------------
# Wrapper helpers
# ---------------------------------------------------------------------------
def _round_up(v, m=128):
    return ((v + m - 1) // m) * m


def _pad2(w, rows, cols):
    return jnp.pad(w, ((0, rows - w.shape[0]), (0, cols - w.shape[1])))


def _choose_graphs_per_block(batch, nodes):
    """Graphs per grid step: fill the MXU M-dim, keep >= 2 grid steps for v7x."""
    target_rows = 1024                      # v6e / v7x: 256x256 MXU, ample VMEM
    try:
        if "v5" in jax.devices()[0].device_kind.lower():
            target_rows = 256               # v5e: 4x 128x128 MXU, smaller scoped VMEM
    except Exception:
        pass
    g_rows = max(1, target_rows // nodes)
    g_two_steps = max(1, (batch + 1) // 2)  # C >= 2 when B >= 2 (v7x: 2 TensorCores)
    return max(1, min(batch, g_rows, g_two_steps))


def _build_specs(with_buffering, C, G, N, Din, S, GN,
                 H1p, H2p, KSp, HID1p, HID2p, Dp):
    stream_kw = {}
    inv_kw = {}
    if with_buffering:
        inv_kw = {"pipeline_mode": pl.Buffered(1)}          # grid-invariant: 1 buffer
        if C >= 3:
            stream_kw = {"pipeline_mode": pl.Buffered(3)}    # streamed: 3-deep

    def inv(shape):
        n = len(shape)
        return pl.BlockSpec(shape, lambda c, _n=n: (0,) * _n, **inv_kw)

    in_specs = [
        pl.BlockSpec((1, G, N, N), lambda c: (c, 0, 0, 0), **stream_kw),
        pl.BlockSpec((1, G, N, Din), lambda c: (c, 0, 0, 0), **stream_kw),
        pl.BlockSpec((1, G, S), lambda c: (c, 0, 0), **stream_kw),
        inv((Din, H1p)), inv((1, H1p)),
        inv((H1p, H2p)), inv((1, H2p)),
        inv((G, GN)),
        inv((H2p, KSp)), inv((S, KSp)),
        inv((KSp, HID1p)), inv((1, HID1p)),
        inv((HID1p, HID2p)), inv((1, HID2p)),
        inv((HID2p, Dp)), inv((1, Dp)),
    ]
    out_spec = pl.BlockSpec((1, G, Dp), lambda c: (c, 0, 0))
    return in_specs, out_spec


# ---------------------------------------------------------------------------
# Full Net.forward wrapper
# ---------------------------------------------------------------------------
def net_forward(a_norm, feat, self_feat, params, *, graphs_per_block=None):
    """a_norm: (B, N, N) row-normalized adjacency (self-loops, each row sums to 1);
    feat: (B, N, Din) node features; self_feat: (B, S) per-graph features."""
    bf16, f32 = jnp.bfloat16, jnp.float32

    B, N, Din = feat.shape
    S = self_feat.shape[1]
    H1 = params["w_gc1"].shape[1]
    H2 = params["w_gc2"].shape[1]
    HID1 = params["w_fc1"].shape[1]
    HID2 = params["w_fc2"].shape[1]
    Dout = params["w_fc3"].shape[1]

    H1p, H2p = _round_up(H1), _round_up(H2)
    KSp = _round_up(H2 * S)
    HID1p, HID2p, Dp = _round_up(HID1), _round_up(HID2), _round_up(Dout)

    # ---- fold eval-mode BatchNorm1d into fc1 / fc2 (full mean/var/gamma/beta) ----
    s1 = params["bn1_gamma"] / jnp.sqrt(params["bn1_var"] + BN_EPS)
    s2 = params["bn2_gamma"] / jnp.sqrt(params["bn2_var"] + BN_EPS)
    w_fc1f = params["w_fc1"] * s1
    b_fc1f = (params["b_fc1"] - params["bn1_mean"]) * s1 + params["bn1_beta"]
    w_fc2f = params["w_fc2"] * s2
    b_fc2f = (params["b_fc2"] - params["bn2_mean"]) * s2 + params["bn2_beta"]

    # ---- zero-pad output lane dims to 128 multiples; cast weights to bf16 ----
    wg1 = _pad2(params["w_gc1"], Din, H1p).astype(bf16)
    bg1 = _pad2(params["b_gc1"], 1, H1p).astype(f32)
    wg2 = _pad2(params["w_gc2"], H1p, H2p).astype(bf16)
    bg2 = _pad2(params["b_gc2"], 1, H2p).astype(f32)
    wf1 = _pad2(w_fc1f, KSp, HID1p).astype(bf16)
    bf1 = _pad2(b_fc1f, 1, HID1p).astype(f32)
    wf2 = _pad2(w_fc2f, HID1p, HID2p).astype(bf16)
    bf2 = _pad2(b_fc2f, 1, HID2p).astype(f32)
    wf3 = _pad2(params["w_fc3"], HID2p, Dp).astype(bf16)
    bf3 = _pad2(params["b_fc3"], 1, Dp).astype(f32)

    # ---- chunk the batch: G graphs per grid step ----
    if graphs_per_block is None:
        G = _choose_graphs_per_block(B, N)
    else:
        G = max(1, min(B, graphs_per_block))
    C = -(-B // G)
    Bp = C * G
    GN = G * N

    a_in = jnp.pad(a_norm, ((0, Bp - B), (0, 0), (0, 0))).reshape(C, G, N, N).astype(f32)
    x_in = jnp.pad(feat, ((0, Bp - B), (0, 0), (0, 0))).reshape(C, G, N, Din).astype(bf16)
    sf_in = jnp.pad(self_feat, ((0, Bp - B), (0, 0))).reshape(C, G, S).astype(bf16)

    # mean-pool operator (exact f32) and kron-expansion operators (exact 0/1, bf16)
    pool = jnp.kron(jnp.eye(G, dtype=f32), jnp.full((1, N), 1.0 / N, f32))       # (G, GN)
    e_hg = _pad2(jnp.kron(jnp.eye(H2, dtype=f32), jnp.ones((1, S), f32)),
                 H2p, KSp).astype(bf16)                                           # (H2p, KSp)
    e_sf = _pad2(jnp.tile(jnp.eye(S, dtype=f32), (1, H2)), S, KSp).astype(bf16)   # (S, KSp)

    operands = (a_in, x_in, sf_in, wg1, bg1, wg2, bg2, pool, e_hg, e_sf,
                wf1, bf1, wf2, bf2, wf3, bf3)

    def run(with_buffering):
        in_specs, out_spec = _build_specs(with_buffering, C, G, N, Din, S, GN,
                                          H1p, H2p, KSp, HID1p, HID2p, Dp)
        return pl.pallas_call(
            _fused_kernel,
            out_shape=jax.ShapeDtypeStruct((C, G, Dp), f32),
            grid=(C,),
            in_specs=in_specs,
            out_specs=out_spec,
            compiler_params=pltpu.CompilerParams(
                dimension_semantics=("parallel",)),
        )(*operands)

    try:
        out = run(True)
    except Exception:
        # Pallas build rejects pipeline_mode / Buffered(1): fall back to the
        # default double-buffering (identical semantics).
        out = run(False)

    # drop lane padding and batch padding (layout plumbing, outside the kernel)
    return out.reshape(Bp, Dp)[:B, :Dout]


# ---------------------------------------------------------------------------
# Pure-JAX reference (mirrors the kernel's bf16 boundary casts, f32 accumulation)
# ---------------------------------------------------------------------------
def reference_forward(a_norm, feat, self_feat, params):
    bf16, f32 = jnp.bfloat16, jnp.float32
    hi = jax.lax.Precision.HIGHEST
    B = feat.shape[0]

    def mm16(a_, b_):       # bf16 inputs, f32 accumulation (matches kernel dots)
        return jnp.dot(a_.astype(bf16), b_.astype(bf16), preferred_element_type=f32)

    p = params
    s1 = p["bn1_gamma"] / jnp.sqrt(p["bn1_var"] + BN_EPS)
    s2 = p["bn2_gamma"] / jnp.sqrt(p["bn2_var"] + BN_EPS)
    w1, b1 = p["w_fc1"] * s1, (p["b_fc1"] - p["bn1_mean"]) * s1 + p["bn1_beta"]
    w2, b2 = p["w_fc2"] * s2, (p["b_fc2"] - p["bn2_mean"]) * s2 + p["bn2_beta"]

    x = feat.astype(bf16).astype(f32)
    h = jnp.einsum("bvu,buf->bvf", a_norm, x, precision=hi)
    h = jnp.maximum(mm16(h, p["w_gc1"]) + p["b_gc1"], 0.0)
    h = jnp.einsum("bvu,buf->bvf", a_norm, h, precision=hi)
    h = jnp.maximum(mm16(h, p["w_gc2"]) + p["b_gc2"], 0.0)
    hg = jnp.mean(h, axis=1)
    hg16 = hg.astype(bf16).astype(f32)
    sf16 = self_feat.astype(bf16).astype(f32)
    xk = (hg16[:, :, None] * sf16[:, None, :]).reshape(B, -1)
    o = jnp.maximum(mm16(xk, w1) + b1, 0.0)
    o = jnp.maximum(mm16(o, w2) + b2, 0.0)
    return mm16(o, p["w_fc3"]) + p["b_fc3"]


if __name__ == "__main__":
    key = jax.random.PRNGKey(0)
    B, N = 2, 8
    dim_in, dim_self_feat, dim_out = 16, 10, 4   # fc1 = Linear(20*10, 64) => S = 10
    H1, H2 = 100, 20
    HID1, HID2 = 64, 16

    keys = jax.random.split(key, 16)

    feat = jax.random.normal(keys[0], (B, N, dim_in), jnp.float32)
    self_feat = jax.random.normal(keys[1], (B, dim_self_feat), jnp.float32)

    # random symmetric adjacency with self-loops, row-normalized so that per-graph
    # A @ h implements the DGL copy_u message + mean reduce used by GCNLayer.
    adj = (jax.random.uniform(keys[2], (B, N, N)) < 0.4).astype(jnp.float32)
    adj = jnp.maximum(adj, jnp.transpose(adj, (0, 2, 1)))
    adj = jnp.maximum(adj, jnp.eye(N, dtype=jnp.float32)[None])
    a_norm = adj / jnp.sum(adj, axis=-1, keepdims=True)

    def init_linear(k, din, dout):
        kw, kb = jax.random.split(k)
        return (0.1 * jax.random.normal(kw, (din, dout), jnp.float32),
                0.1 * jax.random.normal(kb, (1, dout), jnp.float32))

    w_gc1, b_gc1 = init_linear(keys[3], dim_in, H1)
    w_gc2, b_gc2 = init_linear(keys[4], H1, H2)
    w_fc1, b_fc1 = init_linear(keys[5], H2 * dim_self_feat, HID1)
    w_fc2, b_fc2 = init_linear(keys[6], HID1, HID2)
    w_fc3, b_fc3 = init_linear(keys[7], HID2, dim_out)

    params = dict(
        w_gc1=w_gc1, b_gc1=b_gc1, w_gc2=w_gc2, b_gc2=b_gc2,
        w_fc1=w_fc1, b_fc1=b_fc1, w_fc2=w_fc2, b_fc2=b_fc2,
        w_fc3=w_fc3, b_fc3=b_fc3,
        bn1_gamma=1.0 + 0.05 * jax.random.normal(keys[8], (1, HID1), jnp.float32),
        bn1_beta=0.05 * jax.random.normal(keys[9], (1, HID1), jnp.float32),
        bn1_mean=0.05 * jax.random.normal(keys[10], (1, HID1), jnp.float32),
        bn1_var=1.0 + 0.1 * jax.random.uniform(keys[11], (1, HID1), jnp.float32),
        bn2_gamma=1.0 + 0.05 * jax.random.normal(keys[12], (1, HID2), jnp.float32),
        bn2_beta=0.05 * jax.random.normal(keys[13], (1, HID2), jnp.float32),
        bn2_mean=0.05 * jax.random.normal(keys[14], (1, HID2), jnp.float32),
        bn2_var=1.0 + 0.1 * jax.random.uniform(keys[15], (1, HID2), jnp.float32),
    )

    out = net_forward(a_norm, feat, self_feat, params)
    out = jax.block_until_ready(out)

    ref = reference_forward(a_norm, feat, self_feat, params)
    assert out.shape == (B, dim_out)
    assert jnp.allclose(out, ref, rtol=1e-3, atol=1e-3), \
        "Pallas output mismatch vs reference"
    print("KERNEL_OK")
</pallas_src>

<mosaic_0001>
module attributes {stable_mosaic.version = 11 : i64} {
  func.func @_fused_kernel(%arg0: i32, %arg1: memref<1x1x8x8xf32, #tpu.memory_space<vmem>>, %arg2: memref<1x1x8x16xbf16, #tpu.memory_space<vmem>>, %arg3: memref<1x1x10xbf16, #tpu.memory_space<vmem>>, %arg4: memref<16x128xbf16, #tpu.memory_space<vmem>>, %arg5: memref<1x128xf32, #tpu.memory_space<vmem>>, %arg6: memref<128x128xbf16, #tpu.memory_space<vmem>>, %arg7: memref<1x128xf32, #tpu.memory_space<vmem>>, %arg8: memref<1x8xf32, #tpu.memory_space<vmem>>, %arg9: memref<128x256xbf16, #tpu.memory_space<vmem>>, %arg10: memref<10x256xbf16, #tpu.memory_space<vmem>>, %arg11: memref<256x128xbf16, #tpu.memory_space<vmem>>, %arg12: memref<1x128xf32, #tpu.memory_space<vmem>>, %arg13: memref<128x128xbf16, #tpu.memory_space<vmem>>, %arg14: memref<1x128xf32, #tpu.memory_space<vmem>>, %arg15: memref<128x128xbf16, #tpu.memory_space<vmem>>, %arg16: memref<1x128xf32, #tpu.memory_space<vmem>>, %arg17: memref<1x1x128xf32, #tpu.memory_space<vmem>>) attributes {dimension_semantics = [#tpu.dimension_semantics<parallel>], iteration_bounds = array<i64: 2>, scalar_prefetch = 0 : i64, scratch_operands = 0 : i64, tpu.core_type = #tpu.core_type<tc>, window_params = [{transform_indices = @transform_0, window_bounds = array<i64: 1, 1, 8, 8>}, {transform_indices = @transform_1, window_bounds = array<i64: 1, 1, 8, 16>}, {transform_indices = @transform_2, window_bounds = array<i64: 1, 1, 10>}, {pipeline_mode = #tpu.pipeline_mode<synchronous>, transform_indices = @transform_3, window_bounds = array<i64: 16, 128>}, {pipeline_mode = #tpu.pipeline_mode<synchronous>, transform_indices = @transform_4, window_bounds = array<i64: 1, 128>}, {pipeline_mode = #tpu.pipeline_mode<synchronous>, transform_indices = @transform_5, window_bounds = array<i64: 128, 128>}, {pipeline_mode = #tpu.pipeline_mode<synchronous>, transform_indices = @transform_6, window_bounds = array<i64: 1, 128>}, {pipeline_mode = #tpu.pipeline_mode<synchronous>, transform_indices = @transform_7, window_bounds = array<i64: 1, 8>}, {pipeline_mode = #tpu.pipeline_mode<synchronous>, transform_indices = @transform_8, window_bounds = array<i64: 128, 256>}, {pipeline_mode = #tpu.pipeline_mode<synchronous>, transform_indices = @transform_9, window_bounds = array<i64: 10, 256>}, {pipeline_mode = #tpu.pipeline_mode<synchronous>, transform_indices = @transform_10, window_bounds = array<i64: 256, 128>}, {pipeline_mode = #tpu.pipeline_mode<synchronous>, transform_indices = @transform_11, window_bounds = array<i64: 1, 128>}, {pipeline_mode = #tpu.pipeline_mode<synchronous>, transform_indices = @transform_12, window_bounds = array<i64: 128, 128>}, {pipeline_mode = #tpu.pipeline_mode<synchronous>, transform_indices = @transform_13, window_bounds = array<i64: 1, 128>}, {pipeline_mode = #tpu.pipeline_mode<synchronous>, transform_indices = @transform_14, window_bounds = array<i64: 128, 128>}, {pipeline_mode = #tpu.pipeline_mode<synchronous>, transform_indices = @transform_15, window_bounds = array<i64: 1, 128>}, {transform_indices = @transform_16, window_bounds = array<i64: 1, 1, 128>}]} {
    %c0 = arith.constant 0 : index
    %c0_0 = arith.constant 0 : index
    %c0_1 = arith.constant 0 : index
    %c0_2 = arith.constant 0 : index
    %0 = vector.load %arg1[%c0, %c0_0, %c0_1, %c0_2] : memref<1x1x8x8xf32, #tpu.memory_space<vmem>>, vector<1x1x8x8xf32>
    %1 = vector.shape_cast %0 : vector<1x1x8x8xf32> to vector<1x8x8xf32>
    %c0_3 = arith.constant 0 : index
    %c0_4 = arith.constant 0 : index
    %c0_5 = arith.constant 0 : index
    %c0_6 = arith.constant 0 : index
    %2 = vector.load %arg2[%c0_3, %c0_4, %c0_5, %c0_6] : memref<1x1x8x16xbf16, #tpu.memory_space<vmem>>, vector<1x1x8x16xbf16>
    %3 = vector.shape_cast %2 : vector<1x1x8x16xbf16> to vector<1x8x16xbf16>
    %4 = arith.extf %3 : vector<1x8x16xbf16> to vector<1x8x16xf32>
    %c0_7 = arith.constant 0 : index
    %c0_8 = arith.constant 0 : index
    %c0_9 = arith.constant 0 : index
    %5 = vector.load %arg3[%c0_7, %c0_8, %c0_9] : memref<1x1x10xbf16, #tpu.memory_space<vmem>>, vector<1x1x10xbf16>
    %6 = vector.shape_cast %5 : vector<1x1x10xbf16> to vector<1x10xbf16>
    "tpu.trace_start"() <{level = 10 : i32, message = "gvu,guf->gvf"}> : () -> ()
    %cst = arith.constant dense<0.000000e+00> : vector<1x8x16xf32>
    %7 = tpu.matmul %1, %4, %cst {dimension_numbers = #tpu.dot_dimension_numbers<[2], [1], [1], [2], [0, 0, 0, 1, 1, 2], [0], [0]>} : vector<1x8x8xf32>, vector<1x8x16xf32>, vector<1x8x16xf32> -> vector<1x8x16xf32>
    "tpu.trace_stop"() : () -> ()
    %8 = vector.shape_cast %7 : vector<1x8x16xf32> to vector<8x16xf32>
    %9 = arith.truncf %8 : vector<8x16xf32> to vector<8x16xbf16>
    %c0_10 = arith.constant 0 : index
    %c0_11 = arith.constant 0 : index
    %10 = vector.load %arg4[%c0_10, %c0_11] : memref<16x128xbf16, #tpu.memory_space<vmem>>, vector<16x128xbf16>
    %cst_12 = arith.constant dense<0.000000e+00> : vector<8x128xf32>
    %11 = tpu.matmul %9, %10, %cst_12 {dimension_numbers = #tpu.dot_dimension_numbers<[1], [0], [0], [1], [0, 0, 1, 1], [], []>} : vector<8x16xbf16>, vector<16x128xbf16>, vector<8x128xf32> -> vector<8x128xf32>
    %c0_13 = arith.constant 0 : index
    %c0_14 = arith.constant 0 : index
    %12 = vector.load %arg5[%c0_13, %c0_14] : memref<1x128xf32, #tpu.memory_space<vmem>>, vector<1x128xf32>
    %13 = vector.broadcast %12 : vector<1x128xf32> to vector<8x128xf32>
    %14 = arith.addf %11, %13 : vector<8x128xf32>
    %cst_15 = arith.constant 0.000000e+00 : f32
    %15 = vector.broadcast %cst_15 : f32 to vector<8x128xf32>
    %16 = arith.maximumf %14, %15 : vector<8x128xf32>
    %17 = vector.shape_cast %16 : vector<8x128xf32> to vector<1x8x128xf32>
    "tpu.trace_start"() <{level = 10 : i32, message = "gvu,guf->gvf"}> : () -> ()
    %cst_16 = arith.constant dense<0.000000e+00> : vector<1x8x128xf32>
    %18 = tpu.matmul %1, %17, %cst_16 {dimension_numbers = #tpu.dot_dimension_numbers<[2], [1], [1], [2], [0, 0, 0, 1, 1, 2], [0], [0]>} : vector<1x8x8xf32>, vector<1x8x128xf32>, vector<1x8x128xf32> -> vector<1x8x128xf32>
    "tpu.trace_stop"() : () -> ()
    %19 = vector.shape_cast %18 : vector<1x8x128xf32> to vector<8x128xf32>
    %20 = arith.truncf %19 : vector<8x128xf32> to vector<8x128xbf16>
    %c0_17 = arith.constant 0 : index
    %c0_18 = arith.constant 0 : index
    %21 = vector.load %arg6[%c0_17, %c0_18] : memref<128x128xbf16, #tpu.memory_space<vmem>>, vector<128x128xbf16>
    %cst_19 = arith.constant dense<0.000000e+00> : vector<8x128xf32>
    %22 = tpu.matmul %20, %21, %cst_19 {dimension_numbers = #tpu.dot_dimension_numbers<[1], [0], [0], [1], [0, 0, 1, 1], [], []>} : vector<8x128xbf16>, vector<128x128xbf16>, vector<8x128xf32> -> vector<8x128xf32>
    %c0_20 = arith.constant 0 : index
    %c0_21 = arith.constant 0 : index
    %23 = vector.load %arg7[%c0_20, %c0_21] : memref<1x128xf32, #tpu.memory_space<vmem>>, vector<1x128xf32>
    %24 = vector.broadcast %23 : vector<1x128xf32> to vector<8x128xf32>
    %25 = arith.addf %22, %24 : vector<8x128xf32>
    %cst_22 = arith.constant 0.000000e+00 : f32
    %26 = vector.broadcast %cst_22 : f32 to vector<8x128xf32>
    %27 = arith.maximumf %25, %26 : vector<8x128xf32>
    %c0_23 = arith.constant 0 : index
    %c0_24 = arith.constant 0 : index
    %28 = vector.load %arg8[%c0_23, %c0_24] : memref<1x8xf32, #tpu.memory_space<vmem>>, vector<1x8xf32>
    %cst_25 = arith.constant dense<0.000000e+00> : vector<1x128xf32>
    %29 = tpu.matmul %28, %27, %cst_25 {dimension_numbers = #tpu.dot_dimension_numbers<[1], [0], [0], [1], [0, 0, 1, 1], [], []>} : vector<1x8xf32>, vector<8x128xf32>, vector<1x128xf32> -> vector<1x128xf32>
    %30 = arith.truncf %29 : vector<1x128xf32> to vector<1x128xbf16>
    %c0_26 = arith.constant 0 : index
    %c0_27 = arith.constant 0 : index
    %31 = vector.load %arg9[%c0_26, %c0_27] : memref<128x256xbf16, #tpu.memory_space<vmem>>, vector<128x256xbf16>
    %cst_28 = arith.constant dense<0.000000e+00> : vector<1x256xf32>
    %32 = tpu.matmul %30, %31, %cst_28 {dimension_numbers = #tpu.dot_dimension_numbers<[1], [0], [0], [1], [0, 0, 1, 1], [], []>} : vector<1x128xbf16>, vector<128x256xbf16>, vector<1x256xf32> -> vector<1x256xf32>
    %c0_29 = arith.constant 0 : index
    %c0_30 = arith.constant 0 : index
    %33 = vector.load %arg10[%c0_29, %c0_30] : memref<10x256xbf16, #tpu.memory_space<vmem>>, vector<10x256xbf16>
    %cst_31 = arith.constant dense<0.000000e+00> : vector<1x256xf32>
    %34 = tpu.matmul %6, %33, %cst_31 {dimension_numbers = #tpu.dot_dimension_numbers<[1], [0], [0], [1], [0, 0, 1, 1], [], []>} : vector<1x10xbf16>, vector<10x256xbf16>, vector<1x256xf32> -> vector<1x256xf32>
    %35 = arith.mulf %32, %34 : vector<1x256xf32>
    %36 = arith.truncf %35 : vector<1x256xf32> to vector<1x256xbf16>
    %c0_32 = arith.constant 0 : index
    %c0_33 = arith.constant 0 : index
    %37 = vector.load %arg11[%c0_32, %c0_33] : memref<256x128xbf16, #tpu.memory_space<vmem>>, vector<256x128xbf16>
    %cst_34 = arith.constant dense<0.000000e+00> : vector<1x128xf32>
    %38 = tpu.matmul %36, %37, %cst_34 {dimension_numbers = #tpu.dot_dimension_numbers<[1], [0], [0], [1], [0, 0, 1, 1], [], []>} : vector<1x256xbf16>, vector<256x128xbf16>, vector<1x128xf32> -> vector<1x128xf32>
    %c0_35 = arith.constant 0 : index
    %c0_36 = arith.constant 0 : index
    %39 = vector.load %arg12[%c0_35, %c0_36] : memref<1x128xf32, #tpu.memory_space<vmem>>, vector<1x128xf32>
    %40 = arith.addf %38, %39 : vector<1x128xf32>
    %cst_37 = arith.constant 0.000000e+00 : f32
    %41 = vector.broadcast %cst_37 : f32 to vector<1x128xf32>
    %42 = arith.maximumf %40, %41 : vector<1x128xf32>
    %43 = arith.truncf %42 : vector<1x128xf32> to vector<1x128xbf16>
    %c0_38 = arith.constant 0 : index
    %c0_39 = arith.constant 0 : index
    %44 = vector.load %arg13[%c0_38, %c0_39] : memref<128x128xbf16, #tpu.memory_space<vmem>>, vector<128x128xbf16>
    %cst_40 = arith.constant dense<0.000000e+00> : vector<1x128xf32>
    %45 = tpu.matmul %43, %44, %cst_40 {dimension_numbers = #tpu.dot_dimension_numbers<[1], [0], [0], [1], [0, 0, 1, 1], [], []>} : vector<1x128xbf16>, vector<128x128xbf16>, vector<1x128xf32> -> vector<1x128xf32>
    %c0_41 = arith.constant 0 : index
    %c0_42 = arith.constant 0 : index
    %46 = vector.load %arg14[%c0_41, %c0_42] : memref<1x128xf32, #tpu.memory_space<vmem>>, vector<1x128xf32>
    %47 = arith.addf %45, %46 : vector<1x128xf32>
    %cst_43 = arith.constant 0.000000e+00 : f32
    %48 = vector.broadcast %cst_43 : f32 to vector<1x128xf32>
    %49 = arith.maximumf %47, %48 : vector<1x128xf32>
    %50 = arith.truncf %49 : vector<1x128xf32> to vector<1x128xbf16>
    %c0_44 = arith.constant 0 : index
    %c0_45 = arith.constant 0 : index
    %51 = vector.load %arg15[%c0_44, %c0_45] : memref<128x128xbf16, #tpu.memory_space<vmem>>, vector<128x128xbf16>
    %cst_46 = arith.constant dense<0.000000e+00> : vector<1x128xf32>
    %52 = tpu.matmul %50, %51, %cst_46 {dimension_numbers = #tpu.dot_dimension_numbers<[1], [0], [0], [1], [0, 0, 1, 1], [], []>} : vector<1x128xbf16>, vector<128x128xbf16>, vector<1x128xf32> -> vector<1x128xf32>
    %c0_47 = arith.constant 0 : index
    %c0_48 = arith.constant 0 : index
    %53 = vector.load %arg16[%c0_47, %c0_48] : memref<1x128xf32, #tpu.memory_space<vmem>>, vector<1x128xf32>
    %54 = arith.addf %52, %53 : vector<1x128xf32>
    %c0_49 = arith.constant 0 : index
    %c0_50 = arith.constant 0 : index
    %c0_51 = arith.constant 0 : index
    %55 = vector.load %arg17[%c0_49, %c0_50, %c0_51] : memref<1x1x128xf32, #tpu.memory_space<vmem>>, vector<1x1x128xf32>
    %56 = vector.shape_cast %55 : vector<1x1x128xf32> to vector<1x128xf32>
    %57 = vector.shape_cast %54 : vector<1x128xf32> to vector<1x1x128xf32>
    tpu.vector_store %arg17[%c0_49, %c0_50, %c0_51], %57 {strides = array<i32>} : memref<1x1x128xf32, #tpu.memory_space<vmem>>, vector<1x1x128xf32>,
    return
  }
  func.func @transform_0(%arg0: i32) -> (i32, i32, i32, i32) {
    %c0_i32 = arith.constant 0 : i32
    %c0_i32_0 = arith.constant 0 : i32
    %c0_i32_1 = arith.constant 0 : i32
    %c0_i32_2 = arith.constant 0 : i32
    return %arg0, %c0_i32, %c0_i32_0, %c0_i32_1 : i32, i32, i32, i32
  }
  func.func @transform_1(%arg0: i32) -> (i32, i32, i32, i32) {
    %c0_i32 = arith.constant 0 : i32
    %c0_i32_0 = arith.constant 0 : i32
    %c0_i32_1 = arith.constant 0 : i32
    %c0_i32_2 = arith.constant 0 : i32
    return %arg0, %c0_i32, %c0_i32_0, %c0_i32_1 : i32, i32, i32, i32
  }
  func.func @transform_2(%arg0: i32) -> (i32, i32, i32) {
    %c0_i32 = arith.constant 0 : i32
    %c0_i32_0 = arith.constant 0 : i32
    %c0_i32_1 = arith.constant 0 : i32
    return %arg0, %c0_i32, %c0_i32_0 : i32, i32, i32
  }
  func.func @transform_3(%arg0: i32) -> (i32, i32) {
    %c0_i32 = arith.constant 0 : i32
    %c0_i32_0 = arith.constant 0 : i32
    %c0_i32_1 = arith.constant 0 : i32
    return %c0_i32, %c0_i32_0 : i32, i32
  }
  func.func @transform_4(%arg0: i32) -> (i32, i32) {
    %c0_i32 = arith.constant 0 : i32
    %c0_i32_0 = arith.constant 0 : i32
    %c0_i32_1 = arith.constant 0 : i32
    return %c0_i32, %c0_i32_0 : i32, i32
  }
  func.func @transform_5(%arg0: i32) -> (i32, i32) {
    %c0_i32 = arith.constant 0 : i32
    %c0_i32_0 = arith.constant 0 : i32
    %c0_i32_1 = arith.constant 0 : i32
    return %c0_i32, %c0_i32_0 : i32, i32
  }
  func.func @transform_6(%arg0: i32) -> (i32, i32) {
    %c0_i32 = arith.constant 0 : i32
    %c0_i32_0 = arith.constant 0 : i32
    %c0_i32_1 = arith.constant 0 : i32
    return %c0_i32, %c0_i32_0 : i32, i32
  }
  func.func @transform_7(%arg0: i32) -> (i32, i32) {
    %c0_i32 = arith.constant 0 : i32
    %c0_i32_0 = arith.constant 0 : i32
    %c0_i32_1 = arith.constant 0 : i32
    return %c0_i32, %c0_i32_0 : i32, i32
  }
  func.func @transform_8(%arg0: i32) -> (i32, i32) {
    %c0_i32 = arith.constant 0 : i32
    %c0_i32_0 = arith.constant 0 : i32
    %c0_i32_1 = arith.constant 0 : i32
    return %c0_i32, %c0_i32_0 : i32, i32
  }
  func.func @transform_9(%arg0: i32) -> (i32, i32) {
    %c0_i32 = arith.constant 0 : i32
    %c0_i32_0 = arith.constant 0 : i32
    %c0_i32_1 = arith.constant 0 : i32
    return %c0_i32, %c0_i32_0 : i32, i32
  }
  func.func @transform_10(%arg0: i32) -> (i32, i32) {
    %c0_i32 = arith.constant 0 : i32
    %c0_i32_0 = arith.constant 0 : i32
    %c0_i32_1 = arith.constant 0 : i32
    return %c0_i32, %c0_i32_0 : i32, i32
  }
  func.func @transform_11(%arg0: i32) -> (i32, i32) {
    %c0_i32 = arith.constant 0 : i32
    %c0_i32_0 = arith.constant 0 : i32
    %c0_i32_1 = arith.constant 0 : i32
    return %c0_i32, %c0_i32_0 : i32, i32
  }
  func.func @transform_12(%arg0: i32) -> (i32, i32) {
    %c0_i32 = arith.constant 0 : i32
    %c0_i32_0 = arith.constant 0 : i32
    %c0_i32_1 = arith.constant 0 : i32
    return %c0_i32, %c0_i32_0 : i32, i32
  }
  func.func @transform_13(%arg0: i32) -> (i32, i32) {
    %c0_i32 = arith.constant 0 : i32
    %c0_i32_0 = arith.constant 0 : i32
    %c0_i32_1 = arith.constant 0 : i32
    return %c0_i32, %c0_i32_0 : i32, i32
  }
  func.func @transform_14(%arg0: i32) -> (i32, i32) {
    %c0_i32 = arith.constant 0 : i32
    %c0_i32_0 = arith.constant 0 : i32
    %c0_i32_1 = arith.constant 0 : i32
    return %c0_i32, %c0_i32_0 : i32, i32
  }
  func.func @transform_15(%arg0: i32) -> (i32, i32) {
    %c0_i32 = arith.constant 0 : i32
    %c0_i32_0 = arith.constant 0 : i32
    %c0_i32_1 = arith.constant 0 : i32
    return %c0_i32, %c0_i32_0 : i32, i32
  }
  func.func @transform_16(%arg0: i32) -> (i32, i32, i32) {
    %c0_i32 = arith.constant 0 : i32
    %c0_i32_0 = arith.constant 0 : i32
    %c0_i32_1 = arith.constant 0 : i32
    return %arg0, %c0_i32, %c0_i32_0 : i32, i32, i32
  }
}

module attributes {stable_mosaic.version = 11 : i64} {
  func.func @_fused_kernel(%arg0: i32, %arg1: memref<1x1x8x8xf32, #tpu.memory_space<vmem>>, %arg2: memref<1x1x8x16xbf16, #tpu.memory_space<vmem>>, %arg3: memref<1x1x10xbf16, #tpu.memory_space<vmem>>, %arg4: memref<16x128xbf16, #tpu.memory_space<vmem>>, %arg5: memref<1x128xf32, #tpu.memory_space<vmem>>, %arg6: memref<128x128xbf16, #tpu.memory_space<vmem>>, %arg7: memref<1x128xf32, #tpu.memory_space<vmem>>, %arg8: memref<1x8xf32, #tpu.memory_space<vmem>>, %arg9: memref<128x256xbf16, #tpu.memory_space<vmem>>, %arg10: memref<10x256xbf16, #tpu.memory_space<vmem>>, %arg11: memref<256x128xbf16, #tpu.memory_space<vmem>>, %arg12: memref<1x128xf32, #tpu.memory_space<vmem>>, %arg13: memref<128x128xbf16, #tpu.memory_space<vmem>>, %arg14: memref<1x128xf32, #tpu.memory_space<vmem>>, %arg15: memref<128x128xbf16, #tpu.memory_space<vmem>>, %arg16: memref<1x128xf32, #tpu.memory_space<vmem>>, %arg17: memref<1x1x128xf32, #tpu.memory_space<vmem>>) attributes {dimension_semantics = [#tpu.dimension_semantics<parallel>], iteration_bounds = array<i64: 2>, scalar_prefetch = 0 : i64, scratch_operands = 0 : i64, tpu.core_type = #tpu.core_type<tc>, window_params = [{transform_indices = @transform_0, window_bounds = array<i64: 1, 1, 8, 8>}, {transform_indices = @transform_1, window_bounds = array<i64: 1, 1, 8, 16>}, {transform_indices = @transform_2, window_bounds = array<i64: 1, 1, 10>}, {pipeline_mode = #tpu.pipeline_mode<synchronous>, transform_indices = @transform_3, window_bounds = array<i64: 16, 128>}, {pipeline_mode = #tpu.pipeline_mode<synchronous>, transform_indices = @transform_4, window_bounds = array<i64: 1, 128>}, {pipeline_mode = #tpu.pipeline_mode<synchronous>, transform_indices = @transform_5, window_bounds = array<i64: 128, 128>}, {pipeline_mode = #tpu.pipeline_mode<synchronous>, transform_indices = @transform_6, window_bounds = array<i64: 1, 128>}, {pipeline_mode = #tpu.pipeline_mode<synchronous>, transform_indices = @transform_7, window_bounds = array<i64: 1, 8>}, {pipeline_mode = #tpu.pipeline_mode<synchronous>, transform_indices = @transform_8, window_bounds = array<i64: 128, 256>}, {pipeline_mode = #tpu.pipeline_mode<synchronous>, transform_indices = @transform_9, window_bounds = array<i64: 10, 256>}, {pipeline_mode = #tpu.pipeline_mode<synchronous>, transform_indices = @transform_10, window_bounds = array<i64: 256, 128>}, {pipeline_mode = #tpu.pipeline_mode<synchronous>, transform_indices = @transform_11, window_bounds = array<i64: 1, 128>}, {pipeline_mode = #tpu.pipeline_mode<synchronous>, transform_indices = @transform_12, window_bounds = array<i64: 128, 128>}, {pipeline_mode = #tpu.pipeline_mode<synchronous>, transform_indices = @transform_13, window_bounds = array<i64: 1, 128>}, {pipeline_mode = #tpu.pipeline_mode<synchronous>, transform_indices = @transform_14, window_bounds = array<i64: 128, 128>}, {pipeline_mode = #tpu.pipeline_mode<synchronous>, transform_indices = @transform_15, window_bounds = array<i64: 1, 128>}, {transform_indices = @transform_16, window_bounds = array<i64: 1, 1, 128>}]} {
    %c0 = arith.constant 0 : index
    %c0_0 = arith.constant 0 : index
    %c0_1 = arith.constant 0 : index
    %c0_2 = arith.constant 0 : index
    %0 = vector.load %arg1[%c0, %c0_0, %c0_1, %c0_2] : memref<1x1x8x8xf32, #tpu.memory_space<vmem>>, vector<1x1x8x8xf32>
    %1 = vector.shape_cast %0 : vector<1x1x8x8xf32> to vector<1x8x8xf32>
    %c0_3 = arith.constant 0 : index
    %c0_4 = arith.constant 0 : index
    %c0_5 = arith.constant 0 : index
    %c0_6 = arith.constant 0 : index
    %2 = vector.load %arg2[%c0_3, %c0_4, %c0_5, %c0_6] : memref<1x1x8x16xbf16, #tpu.memory_space<vmem>>, vector<1x1x8x16xbf16>
    %3 = vector.shape_cast %2 : vector<1x1x8x16xbf16> to vector<1x8x16xbf16>
    %4 = arith.extf %3 : vector<1x8x16xbf16> to vector<1x8x16xf32>
    %c0_7 = arith.constant 0 : index
    %c0_8 = arith.constant 0 : index
    %c0_9 = arith.constant 0 : index
    %5 = vector.load %arg3[%c0_7, %c0_8, %c0_9] : memref<1x1x10xbf16, #tpu.memory_space<vmem>>, vector<1x1x10xbf16>
    %6 = vector.shape_cast %5 : vector<1x1x10xbf16> to vector<1x10xbf16>
    "tpu.trace_start"() <{level = 10 : i32, message = "gvu,guf->gvf"}> : () -> ()
    %cst = arith.constant dense<0.000000e+00> : vector<1x8x16xf32>
    %7 = tpu.matmul %1, %4, %cst {dimension_numbers = #tpu.dot_dimension_numbers<[2], [1], [1], [2], [0, 0, 0, 1, 1, 2], [0], [0]>} : vector<1x8x8xf32>, vector<1x8x16xf32>, vector<1x8x16xf32> -> vector<1x8x16xf32>
    "tpu.trace_stop"() : () -> ()
    %8 = vector.shape_cast %7 : vector<1x8x16xf32> to vector<8x16xf32>
    %9 = arith.truncf %8 : vector<8x16xf32> to vector<8x16xbf16>
    %c0_10 = arith.constant 0 : index
    %c0_11 = arith.constant 0 : index
    %10 = vector.load %arg4[%c0_10, %c0_11] : memref<16x128xbf16, #tpu.memory_space<vmem>>, vector<16x128xbf16>
    %cst_12 = arith.constant dense<0.000000e+00> : vector<8x128xf32>
    %11 = tpu.matmul %9, %10, %cst_12 {dimension_numbers = #tpu.dot_dimension_numbers<[1], [0], [0], [1], [0, 0, 1, 1], [], []>} : vector<8x16xbf16>, vector<16x128xbf16>, vector<8x128xf32> -> vector<8x128xf32>
    %c0_13 = arith.constant 0 : index
    %c0_14 = arith.constant 0 : index
    %12 = vector.load %arg5[%c0_13, %c0_14] : memref<1x128xf32, #tpu.memory_space<vmem>>, vector<1x128xf32>
    %13 = vector.broadcast %12 : vector<1x128xf32> to vector<8x128xf32>
    %14 = arith.addf %11, %13 : vector<8x128xf32>
    %cst_15 = arith.constant 0.000000e+00 : f32
    %15 = vector.broadcast %cst_15 : f32 to vector<8x128xf32>
    %16 = arith.maximumf %14, %15 : vector<8x128xf32>
    %17 = vector.shape_cast %16 : vector<8x128xf32> to vector<1x8x128xf32>
    "tpu.trace_start"() <{level = 10 : i32, message = "gvu,guf->gvf"}> : () -> ()
    %cst_16 = arith.constant dense<0.000000e+00> : vector<1x8x128xf32>
    %18 = tpu.matmul %1, %17, %cst_16 {dimension_numbers = #tpu.dot_dimension_numbers<[2], [1], [1], [2], [0, 0, 0, 1, 1, 2], [0], [0]>} : vector<1x8x8xf32>, vector<1x8x128xf32>, vector<1x8x128xf32> -> vector<1x8x128xf32>
    "tpu.trace_stop"() : () -> ()
    %19 = vector.shape_cast %18 : vector<1x8x128xf32> to vector<8x128xf32>
    %20 = arith.truncf %19 : vector<8x128xf32> to vector<8x128xbf16>
    %c0_17 = arith.constant 0 : index
    %c0_18 = arith.constant 0 : index
    %21 = vector.load %arg6[%c0_17, %c0_18] : memref<128x128xbf16, #tpu.memory_space<vmem>>, vector<128x128xbf16>
    %cst_19 = arith.constant dense<0.000000e+00> : vector<8x128xf32>
    %22 = tpu.matmul %20, %21, %cst_19 {dimension_numbers = #tpu.dot_dimension_numbers<[1], [0], [0], [1], [0, 0, 1, 1], [], []>} : vector<8x128xbf16>, vector<128x128xbf16>, vector<8x128xf32> -> vector<8x128xf32>
    %c0_20 = arith.constant 0 : index
    %c0_21 = arith.constant 0 : index
    %23 = vector.load %arg7[%c0_20, %c0_21] : memref<1x128xf32, #tpu.memory_space<vmem>>, vector<1x128xf32>
    %24 = vector.broadcast %23 : vector<1x128xf32> to vector<8x128xf32>
    %25 = arith.addf %22, %24 : vector<8x128xf32>
    %cst_22 = arith.constant 0.000000e+00 : f32
    %26 = vector.broadcast %cst_22 : f32 to vector<8x128xf32>
    %27 = arith.maximumf %25, %26 : vector<8x128xf32>
    %c0_23 = arith.constant 0 : index
    %c0_24 = arith.constant 0 : index
    %28 = vector.load %arg8[%c0_23, %c0_24] : memref<1x8xf32, #tpu.memory_space<vmem>>, vector<1x8xf32>
    %cst_25 = arith.constant dense<0.000000e+00> : vector<1x128xf32>
    %29 = tpu.matmul %28, %27, %cst_25 {dimension_numbers = #tpu.dot_dimension_numbers<[1], [0], [0], [1], [0, 0, 1, 1], [], []>} : vector<1x8xf32>, vector<8x128xf32>, vector<1x128xf32> -> vector<1x128xf32>
    %30 = arith.truncf %29 : vector<1x128xf32> to vector<1x128xbf16>
    %c0_26 = arith.constant 0 : index
    %c0_27 = arith.constant 0 : index
    %31 = vector.load %arg9[%c0_26, %c0_27] : memref<128x256xbf16, #tpu.memory_space<vmem>>, vector<128x256xbf16>
    %cst_28 = arith.constant dense<0.000000e+00> : vector<1x256xf32>
    %32 = tpu.matmul %30, %31, %cst_28 {dimension_numbers = #tpu.dot_dimension_numbers<[1], [0], [0], [1], [0, 0, 1, 1], [], []>} : vector<1x128xbf16>, vector<128x256xbf16>, vector<1x256xf32> -> vector<1x256xf32>
    %c0_29 = arith.constant 0 : index
    %c0_30 = arith.constant 0 : index
    %33 = vector.load %arg10[%c0_29, %c0_30] : memref<10x256xbf16, #tpu.memory_space<vmem>>, vector<10x256xbf16>
    %cst_31 = arith.constant dense<0.000000e+00> : vector<1x256xf32>
    %34 = tpu.matmul %6, %33, %cst_31 {dimension_numbers = #tpu.dot_dimension_numbers<[1], [0], [0], [1], [0, 0, 1, 1], [], []>} : vector<1x10xbf16>, vector<10x256xbf16>, vector<1x256xf32> -> vector<1x256xf32>
    %35 = arith.mulf %32, %34 : vector<1x256xf32>
    %36 = arith.truncf %35 : vector<1x256xf32> to vector<1x256xbf16>
    %c0_32 = arith.constant 0 : index
    %c0_33 = arith.constant 0 : index
    %37 = vector.load %arg11[%c0_32, %c0_33] : memref<256x128xbf16, #tpu.memory_space<vmem>>, vector<256x128xbf16>
    %cst_34 = arith.constant dense<0.000000e+00> : vector<1x128xf32>
    %38 = tpu.matmul %36, %37, %cst_34 {dimension_numbers = #tpu.dot_dimension_numbers<[1], [0], [0], [1], [0, 0, 1, 1], [], []>} : vector<1x256xbf16>, vector<256x128xbf16>, vector<1x128xf32> -> vector<1x128xf32>
    %c0_35 = arith.constant 0 : index
    %c0_36 = arith.constant 0 : index
    %39 = vector.load %arg12[%c0_35, %c0_36] : memref<1x128xf32, #tpu.memory_space<vmem>>, vector<1x128xf32>
    %40 = arith.addf %38, %39 : vector<1x128xf32>
    %cst_37 = arith.constant 0.000000e+00 : f32
    %41 = vector.broadcast %cst_37 : f32 to vector<1x128xf32>
    %42 = arith.maximumf %40, %41 : vector<1x128xf32>
    %43 = arith.truncf %42 : vector<1x128xf32> to vector<1x128xbf16>
    %c0_38 = arith.constant 0 : index
    %c0_39 = arith.constant 0 : index
    %44 = vector.load %arg13[%c0_38, %c0_39] : memref<128x128xbf16, #tpu.memory_space<vmem>>, vector<128x128xbf16>
    %cst_40 = arith.constant dense<0.000000e+00> : vector<1x128xf32>
    %45 = tpu.matmul %43, %44, %cst_40 {dimension_numbers = #tpu.dot_dimension_numbers<[1], [0], [0], [1], [0, 0, 1, 1], [], []>} : vector<1x128xbf16>, vector<128x128xbf16>, vector<1x128xf32> -> vector<1x128xf32>
    %c0_41 = arith.constant 0 : index
    %c0_42 = arith.constant 0 : index
    %46 = vector.load %arg14[%c0_41, %c0_42] : memref<1x128xf32, #tpu.memory_space<vmem>>, vector<1x128xf32>
    %47 = arith.addf %45, %46 : vector<1x128xf32>
    %cst_43 = arith.constant 0.000000e+00 : f32
    %48 = vector.broadcast %cst_43 : f32 to vector<1x128xf32>
    %49 = arith.maximumf %47, %48 : vector<1x128xf32>
    %50 = arith.truncf %49 : vector<1x128xf32> to vector<1x128xbf16>
    %c0_44 = arith.constant 0 : index
    %c0_45 = arith.constant 0 : index
    %51 = vector.load %arg15[%c0_44, %c0_45] : memref<128x128xbf16, #tpu.memory_space<vmem>>, vector<128x128xbf16>
    %cst_46 = arith.constant dense<0.000000e+00> : vector<1x128xf32>
    %52 = tpu.matmul %50, %51, %cst_46 {dimension_numbers = #tpu.dot_dimension_numbers<[1], [0], [0], [1], [0, 0, 1, 1], [], []>} : vector<1x128xbf16>, vector<128x128xbf16>, vector<1x128xf32> -> vector<1x128xf32>
    %c0_47 = arith.constant 0 : index
    %c0_48 = arith.constant 0 : index
    %53 = vector.load %arg16[%c0_47, %c0_48] : memref<1x128xf32, #tpu.memory_space<vmem>>, vector<1x128xf32>
    %54 = arith.addf %52, %53 : vector<1x128xf32>
    %c0_49 = arith.constant 0 : index
    %c0_50 = arith.constant 0 : index
    %c0_51 = arith.constant 0 : index
    %55 = vector.load %arg17[%c0_49, %c0_50, %c0_51] : memref<1x1x128xf32, #tpu.memory_space<vmem>>, vector<1x1x128xf32>
    %56 = vector.shape_cast %55 : vector<1x1x128xf32> to vector<1x128xf32>
    %57 = vector.shape_cast %54 : vector<1x128xf32> to vector<1x1x128xf32>
    tpu.vector_store %arg17[%c0_49, %c0_50, %c0_51], %57 {strides = array<i32>} : memref<1x1x128xf32, #tpu.memory_space<vmem>>, vector<1x1x128xf32>,
    return
  }
  func.func @transform_0(%arg0: i32) -> (i32, i32, i32, i32) {
    %c0_i32 = arith.constant 0 : i32
    %c0_i32_0 = arith.constant 0 : i32
    %c0_i32_1 = arith.constant 0 : i32
    %c0_i32_2 = arith.constant 0 : i32
    return %arg0, %c0_i32, %c0_i32_0, %c0_i32_1 : i32, i32, i32, i32
  }
  func.func @transform_1(%arg0: i32) -> (i32, i32, i32, i32) {
    %c0_i32 = arith.constant 0 : i32
    %c0_i32_0 = arith.constant 0 : i32
    %c0_i32_1 = arith.constant 0 : i32
    %c0_i32_2 = arith.constant 0 : i32
    return %arg0, %c0_i32, %c0_i32_0, %c0_i32_1 : i32, i32, i32, i32
  }
  func.func @transform_2(%arg0: i32) -> (i32, i32, i32) {
    %c0_i32 = arith.constant 0 : i32
    %c0_i32_0 = arith.constant 0 : i32
    %c0_i32_1 = arith.constant 0 : i32
    return %arg0, %c0_i32, %c0_i32_0 : i32, i32, i32
  }
  func.func @transform_3(%arg0: i32) -> (i32, i32) {
    %c0_i32 = arith.constant 0 : i32
    %c0_i32_0 = arith.constant 0 : i32
    %c0_i32_1 = arith.constant 0 : i32
    return %c0_i32, %c0_i32_0 : i32, i32
  }
  func.func @transform_4(%arg0: i32) -> (i32, i32) {
    %c0_i32 = arith.constant 0 : i32
    %c0_i32_0 = arith.constant 0 : i32
    %c0_i32_1 = arith.constant 0 : i32
    return %c0_i32, %c0_i32_0 : i32, i32
  }
  func.func @transform_5(%arg0: i32) -> (i32, i32) {
    %c0_i32 = arith.constant 0 : i32
    %c0_i32_0 = arith.constant 0 : i32
    %c0_i32_1 = arith.constant 0 : i32
    return %c0_i32, %c0_i32_0 : i32, i32
  }
  func.func @transform_6(%arg0: i32) -> (i32, i32) {
    %c0_i32 = arith.constant 0 : i32
    %c0_i32_0 = arith.constant 0 : i32
    %c0_i32_1 = arith.constant 0 : i32
    return %c0_i32, %c0_i32_0 : i32, i32
  }
  func.func @transform_7(%arg0: i32) -> (i32, i32) {
    %c0_i32 = arith.constant 0 : i32
    %c0_i32_0 = arith.constant 0 : i32
    %c0_i32_1 = arith.constant 0 : i32
    return %c0_i32, %c0_i32_0 : i32, i32
  }
  func.func @transform_8(%arg0: i32) -> (i32, i32) {
    %c0_i32 = arith.constant 0 : i32
    %c0_i32_0 = arith.constant 0 : i32
    %c0_i32_1 = arith.constant 0 : i32
    return %c0_i32, %c0_i32_0 : i32, i32
  }
  func.func @transform_9(%arg0: i32) -> (i32, i32) {
    %c0_i32 = arith.constant 0 : i32
    %c0_i32_0 = arith.constant 0 : i32
    %c0_i32_1 = arith.constant 0 : i32
    return %c0_i32, %c0_i32_0 : i32, i32
  }
  func.func @transform_10(%arg0: i32) -> (i32, i32) {
    %c0_i32 = arith.constant 0 : i32
    %c0_i32_0 = arith.constant 0 : i32
    %c0_i32_1 = arith.constant 0 : i32
    return %c0_i32, %c0_i32_0 : i32, i32
  }
  func.func @transform_11(%arg0: i32) -> (i32, i32) {
    %c0_i32 = arith.constant 0 : i32
    %c0_i32_0 = arith.constant 0 : i32
    %c0_i32_1 = arith.constant 0 : i32
    return %c0_i32, %c0_i32_0 : i32, i32
  }
  func.func @transform_12(%arg0: i32) -> (i32, i32) {
    %c0_i32 = arith.constant 0 : i32
    %c0_i32_0 = arith.constant 0 : i32
    %c0_i32_1 = arith.constant 0 : i32
    return %c0_i32, %c0_i32_0 : i32, i32
  }
  func.func @transform_13(%arg0: i32) -> (i32, i32) {
    %c0_i32 = arith.constant 0 : i32
    %c0_i32_0 = arith.constant 0 : i32
    %c0_i32_1 = arith.constant 0 : i32
    return %c0_i32, %c0_i32_0 : i32, i32
  }
  func.func @transform_14(%arg0: i32) -> (i32, i32) {
    %c0_i32 = arith.constant 0 : i32
    %c0_i32_0 = arith.constant 0 : i32
    %c0_i32_1 = arith.constant 0 : i32
    return %c0_i32, %c0_i32_0 : i32, i32
  }
  func.func @transform_15(%arg0: i32) -> (i32, i32) {
    %c0_i32 = arith.constant 0 : i32
    %c0_i32_0 = arith.constant 0 : i32
    %c0_i32_1 = arith.constant 0 : i32
    return %c0_i32, %c0_i32_0 : i32, i32
  }
  func.func @transform_16(%arg0: i32) -> (i32, i32, i32) {
    %c0_i32 = arith.constant 0 : i32
    %c0_i32_0 = arith.constant 0 : i32
    %c0_i32_1 = arith.constant 0 : i32
    return %arg0, %c0_i32, %c0_i32_0 : i32, i32, i32
  }
}

</mosaic_0001>

<bundles_post_ra>
// kernel: tpu_custom_call.1
= control target key start
LH: loop header
LB: loop body
LE: loop exit
PB: predicated region body
PF: predicated region fallthrough
CT: control target
= control target key end

     0   :  { %s3012_s0 = inlined_call_operand.hbm [shape: f32[2,1,8,8], index: 0, kind: input, shape index: {}]   ;;  %s3013_s1 = inlined_call_operand.hbm [shape: bf16[2,1,8,16], index: 1, kind: input, shape index: {}]   ;;  %s3014_s2 = inlined_call_operand.vmem [shape: bf16[2,1,10], index: 2, kind: input, shape index: {}]   ;;  %s3015_s3 = inlined_call_operand.vmem [shape: bf16[16,128], index: 3, kind: input, shape index: {}]   ;;  %s3016_s4 = inlined_call_operand.vmem [shape: f32[1,128], index: 4, kind: input, shape index: {}]   ;;  %s3017_s5 = inlined_call_operand.hbm [shape: bf16[128,128], index: 5, kind: input, shape index: {}]   ;;  %s3018_s6 = inlined_call_operand.vmem [shape: f32[1,128], index: 6, kind: input, shape index: {}]   ;;  %s3019_s7 = inlined_call_operand.vmem [shape: f32[1,8], index: 7, kind: input, shape index: {}]   ;;  %s3020_s8 = inlined_call_operand.hbm [shape: bf16[128,256], index: 8, kind: input, shape index: {}]   ;;  %s3021_s9 = inlined_call_operand.vmem [shape: bf16[10,256], index: 9, kind: input, shape index: {}]   ;;  %s3022_s10 = inlined_call_operand.hbm [shape: bf16[256,128], index: 10, kind: input, shape index: {}]   ;;  %s3023_s11 = inlined_call_operand.vmem [shape: f32[1,128], index: 11, kind: input, shape index: {}]   ;;  %s3024_s12 = inlined_call_operand.hbm [shape: bf16[128,128], index: 12, kind: input, shape index: {}]   ;;  %s3025_s13 = inlined_call_operand.vmem [shape: f32[1,128], index: 13, kind: input, shape index: {}]   ;;  %s3026_s14 = inlined_call_operand.hbm [shape: bf16[128,128], index: 14, kind: input, shape index: {}]   ;;  %s3027_s15 = inlined_call_operand.vmem [shape: f32[1,128], index: 15, kind: input, shape index: {}]   ;;  %s3028_s16 = inlined_call_operand.hbm [shape: f32[2,1,128], index: 16, kind: output, shape index: {}]  }
   0x1   :  { %3039 = sst [smem:[#allocation21_spill]] %s3012_s0 }
   0x2   :  { %3040 = sst [smem:[#allocation22_spill]] %s3014_s2 }
   0x3   :  { %3041 = sst [smem:[#allocation23_spill]] %s3017_s5 }
   0x4   :  { %3042 = sst [smem:[#allocation24_spill]] %s3019_s7 }
   0x5   :  { %3043 = sst [smem:[#allocation25_spill]] %s3020_s8 }
   0x6   :  { %3044 = sst [smem:[#allocation26_spill]] %s3021_s9 }
   0x7   :  { %3045 = sst [smem:[#allocation27_spill]] %s3022_s10 }
   0x8   :  { %3046 = sst [smem:[#allocation28_spill]] %s3023_s11 }
   0x9   :  { %3047 = sst [smem:[#allocation29_spill]] %s3024_s12 }
   0xa   :  { %3048 = sst [smem:[#allocation30_spill]] %s3025_s13 }
   0xb   :  { %3049 = sst [smem:[#allocation31_spill]] %s3027_s15 }
   0xc   :  { %3050 = sst [smem:[#allocation32_spill]] %s3028_s16 }
   0xd   :  { %21 = vsyncpa [#allocation3], 0 }
   0xe   :  { %23 = vsyncpa [#allocation3 + $0x1], 0 }
   0xf   :  { %24 = vsyncpa [#allocation6], 0 }
  0x10   :  { %26 = vsyncpa [#allocation6 + $0x1], 0 }
  0x11   :  { %27 = vsyncpa [#allocation9], 0 }
  0x12   :  { %28 = vsyncpa [#allocation12], 0 }
  0x13   :  { %29 = vsyncpa [#allocation4], 0 }
  0x14   :  { %31 = vsyncpa [#allocation4 + $0x1], 0  ;;  %s2591_s21 = smov 0   ;;  %s2593_s22 = smov 0  }
  0x15   :  { %s2595_s23 = smov 0   ;;  %s2597_s24 = smov 0  }
  0x16 LB: > { %s2491_s25 = smov [#allocation7]   ;;  %s2612_s27 = sadd.s32 4294967295, %s2489_s24   ;;  %s2489_s24 = sphi %s2597_s24, %s3087_s24   ;;  %s2485_s23 = sphi %s2595_s23, %s3086_s23   ;;  %s2481_s22 = sphi %s2593_s22, %s3085_s22   ;;  %s2477_s21 = sphi %s2591_s21, %s3084_s21  }
  0x17   : > { %s437_s26 = sshll.u32 %s2491_s25, 4  ;;  %p1803_p0 = scmp.ge.s32.totalorder %s2489_s24, 1  ;;  %s2617_s26 = int_to_ptr.vmem [resolvable:$true] %s437_s26 }
  0x18   : > { %p3034_p1 = scmp.eq.s32.totalorder %s2612_s27, 0  ;;  %p419_p2 = scmp.lt.s32.totalorder %s2489_s24, 3 }
  0x19   : > { %s2492_s29 = smov [#allocation8]   ;;  %s2493_s17 = smov [#allocation11]  }
  0x1a   : > { %p2619_p3 = pnand %p1803_p0, %p419_p2  ;;  %s456_s30 = sshll.u32 %s2492_s29, 4  ;;  %s2632_s30 = int_to_ptr.vmem [resolvable:$true] %s456_s30 }
  0x1b   : > { %s2634_s18 = sshll.u32 %s2493_s17, 4  ;;  %s3053_s5 = sld [smem:[#allocation23_spill]]  ;;  %s489_s18 = int_to_ptr.vmem [resolvable:$true] %s2634_s18 }
  0x1c   : > { %s3051_s28 = scalar_select %p2619_p3, 1, 0 }
  0x1d   : > { %p2056_p5 = pneg %p2619_p3 }
  0x1f   : > { %p2628_p6 = pnand %p2056_p5, %p3034_p1 }
  0x21   : > { %s2207_s25 = scalar_lea.hbm %s3053_s5, 1024  ;;  %p2644_p8 = pneg %p2628_p6 }
  0x22   : > { %p2208_p7 = scmp.ne.s32.totalorder %s3053_s5, %s2207_s25  ;;  %p2214_p11 = scmp.lt.u32.totalorder %s2207_s25, %s3053_s5 }
  0x24   : > { %p2210_p9 = pnand %p2644_p8, %p2208_p7 }
  0x26   : > { %p2211_p10 = pneg %p2210_p9 }
  0x28   : > { %p2216_p12 = pnand %p2214_p11, %p2211_p10 }
  0x2a   : > { %2219 = shalt.err (!%p2216_p12)
}
  0x2b   : > { %s2220_s15 = scalar_lea.vmem %s2617_s26, 1024  ;;  %p2228_p5 = scmp.lt.s32.totalorder %s2617_s26, %s2617_s26 }
  0x2c   : > { %p2221_p13 = scmp.ne.s32.totalorder %s2617_s26, %s2220_s15  ;;  %p2229_p4 = scmp.lt.s32.totalorder %s2220_s15, %s2220_s15 }
  0x2e   : > { %p2223_p0 = pnand %p2221_p13, %p2644_p8  ;;  %p2230_p7 = por %p2229_p4, %p2228_p5 }
  0x30   : > { %p2224_p2 = pneg %p2223_p0 }
  0x32   : > { %p2231_p9 = pnand %p2230_p7, %p2224_p2 }
  0x34   : > { %2234 = shalt.err (!%p2231_p9)
}
  0x35   : > { %s3032_s16 = smov 64   ;;  %s2495_s13 = smov 4  }
  0x36   : > { %2059 = dma.hbm_to_vmem [thread:$0]  (!%p2628_p6), %s3053_s5, 1024, %s2617_s26, [#allocation6], %s3032_s16, %s3032_s16, %s2495_s13  }
  0x37   : > { %s3055_s8 = sld [smem:[#allocation25_spill]] }
  0x3d   : > { %s2235_s15 = scalar_lea.hbm %s3055_s8, 2048 }
  0x3e   : > { %p2236_p4 = scmp.ne.s32.totalorder %s3055_s8, %s2235_s15  ;;  %p2242_p12 = scmp.lt.u32.totalorder %s2235_s15, %s3055_s8 }
  0x40   : > { %p2238_p10 = pnand %p2236_p4, %p2644_p8 }
  0x42   : > { %p2239_p11 = pneg %p2238_p10 }
  0x44   : > { %p2244_p13 = pnand %p2242_p12, %p2239_p11 }
  0x46   : > { %2247 = shalt.err (!%p2244_p13)
}
  0x47   : > { %s2248_s26 = scalar_lea.vmem %s2632_s30, 2048  ;;  %p2256_p7 = scmp.lt.s32.totalorder %s2632_s30, %s2632_s30 }
  0x48   : > { %p2249_p0 = scmp.ne.s32.totalorder %s2632_s30, %s2248_s26  ;;  %p2257_p9 = scmp.lt.s32.totalorder %s2248_s26, %s2248_s26 }
  0x4a   : > { %p2251_p2 = pnand %p2249_p0, %p2644_p8  ;;  %p2258_p4 = por %p2257_p9, %p2256_p7 }
  0x4c   : > { %p2252_p5 = pneg %p2251_p2 }
  0x4e   : > { %p2259_p10 = pnand %p2258_p4, %p2252_p5 }
  0x50   : > { %2262 = shalt.err (!%p2259_p10)
}
  0x51   : > { %s2496_s2 = smov 128   ;;  %s2497_s7 = smov 8  }
  0x52   : > { %2062 = dma.hbm_to_vmem [thread:$0]  (!%p2628_p6), %s3055_s8, 2048, %s2632_s30, [#allocation9], %s2496_s2, %s2496_s2, %s2497_s7  }
  0x53   : > { %s3056_s12 = sld [smem:[#allocation29_spill]] }
  0x59   : > { %s2263_s25 = scalar_lea.hbm %s3056_s12, 1024 }
  0x5a   : > { %p2264_p11 = scmp.ne.s32.totalorder %s3056_s12, %s2263_s25  ;;  %p2270_p0 = scmp.lt.u32.totalorder %s2263_s25, %s3056_s12 }
  0x5c   : > { %p2266_p12 = pnand %p2264_p11, %p2644_p8 }
  0x5e   : > { %p2267_p13 = pneg %p2266_p12 }
  0x60   : > { %p2272_p2 = pnand %p2270_p0, %p2267_p13 }
  0x62   : > { %2275 = shalt.err (!%p2272_p2)
}
  0x63   : > { %s2276_s9 = scalar_lea.vmem %s489_s18, 1024  ;;  %p2284_p4 = scmp.lt.s32.totalorder %s489_s18, %s489_s18 }
  0x64   : > { %p2277_p5 = scmp.ne.s32.totalorder %s489_s18, %s2276_s9  ;;  %p2285_p10 = scmp.lt.s32.totalorder %s2276_s9, %s2276_s9 }
  0x66   : > { %p2279_p7 = pnand %p2277_p5, %p2644_p8  ;;  %p2286_p1 = por %p2285_p10, %p2284_p4 }
  0x68   : > { %p2280_p9 = pneg %p2279_p7 }
  0x6a   : > { %p2287_p3 = pnand %p2286_p1, %p2280_p9 }
  0x6c   : > { %2290 = shalt.err (!%p2287_p3)
}
  0x6d   : > { %s3057_s30 = smov 64   ;;  %s2498_s7 = smov [#allocation10]  }
  0x6e   : > { %2068 = dma.hbm_to_vmem [thread:$0]  (!%p2628_p6), %s3056_s12, 1024, %s489_s18, [#allocation12], %s3057_s30, %s3057_s30, %s2495_s13  }
  0x6f   : > { %s472_s11 = sshll.u32 %s2498_s7, 4  ;;  %s2499_s19 = smov [#allocation13]   ;;  %s473_s11 = int_to_ptr.vmem [resolvable:$true] %s472_s11 }
  0x70   : > { %s504_s20 = sshll.u32 %s2499_s19, 4  ;;  %s3058_s10 = sld [smem:[#allocation27_spill]]  ;;  %s505_s20 = int_to_ptr.vmem [resolvable:$true] %s504_s20 }
  0x76   : > { %s2291_s15 = scalar_lea.hbm %s3058_s10, 2048 }
  0x77   : > { %p2292_p1 = scmp.ne.s32.totalorder %s3058_s10, %s2291_s15  ;;  %p2298_p12 = scmp.lt.u32.totalorder %s2291_s15, %s3058_s10 }
  0x79   : > { %p2294_p3 = pnand %p2292_p1, %p2644_p8 }
  0x7b   : > { %p2295_p11 = pneg %p2294_p3 }
  0x7d   : > { %p2300_p13 = pnand %p2298_p12, %p2295_p11 }
  0x7f   : > { %2303 = shalt.err (!%p2300_p13)
}
  0x80   : > { %s2304_s18 = scalar_lea.vmem %s473_s11, 2048  ;;  %p2312_p7 = scmp.lt.s32.totalorder %s473_s11, %s473_s11 }
  0x81   : > { %p2305_p0 = scmp.ne.s32.totalorder %s473_s11, %s2304_s18  ;;  %p2313_p9 = scmp.lt.s32.totalorder %s2304_s18, %s2304_s18 }
  0x83   : > { %p2307_p2 = pnand %p2305_p0, %p2644_p8  ;;  %p2314_p4 = por %p2313_p9, %p2312_p7 }
  0x85   : > { %p2308_p5 = pneg %p2307_p2 }
  0x87   : > { %p2315_p10 = pnand %p2314_p4, %p2308_p5 }
  0x89   : > { %2318 = shalt.err (!%p2315_p10)
}
  0x8a   : > { %2065 = dma.hbm_to_vmem [thread:$0]  (!%p2628_p6), %s3058_s10, 2048, %s473_s11, [#allocation9], %s3057_s30, %s3057_s30, %s2495_s13  }
  0x8b   : > { %s2319_s25 = scalar_lea.hbm %s3026_s14, 1024 }
  0x8c   : > { %p2320_p1 = scmp.ne.s32.totalorder %s3026_s14, %s2319_s25  ;;  %p2326_p12 = scmp.lt.u32.totalorder %s2319_s25, %s3026_s14 }
  0x8e   : > { %p2322_p3 = pnand %p2320_p1, %p2644_p8 }
  0x90   : > { %p2323_p11 = pneg %p2322_p3 }
  0x92   : > { %p2328_p13 = pnand %p2326_p12, %p2323_p11 }
  0x94   : > { %2331 = shalt.err (!%p2328_p13)
}
  0x95   : > { %s2332_s16 = scalar_lea.vmem %s505_s20, 1024  ;;  %p2340_p7 = scmp.lt.s32.totalorder %s505_s20, %s505_s20 }
  0x96   : > { %p2333_p0 = scmp.ne.s32.totalorder %s505_s20, %s2332_s16  ;;  %p2341_p9 = scmp.lt.s32.totalorder %s2332_s16, %s2332_s16 }
  0x98   : > { %p2335_p2 = pnand %p2333_p0, %p2644_p8  ;;  %p2342_p4 = por %p2341_p9, %p2340_p7 }
  0x9a   : > { %p2336_p5 = pneg %p2335_p2 }
  0x9c   : > { %p2343_p10 = pnand %p2342_p4, %p2336_p5 }
  0x9e   : > { %2346 = shalt.err (!%p2343_p10)
}
  0x9f   : > { %2071 = dma.hbm_to_vmem [thread:$0]  (!%p2628_p6), %s3026_s14, 1024, %s505_s20, [#allocation12], %s3057_s30, %s3057_s30, %s2495_s13  }
  0xa0   : > { %s1802_s0 = sadd.s32 4294967294, %s2489_s24   ;;  %s2757_s29 = sadd.s32 1, %s2489_s24  }
  0xa1   : > { %s44_s5 = sadd.s32 1, %s2485_s23  ;;  %s41_s2 = ssub.s32 %s2489_s24, %s2757_s29 }
  0xa2   : > { %p51_p8 = scmp.ne.s32.totalorder %s2485_s23, %s2481_s22  ;;  %p42_p1 = scmp.eq.s32.totalorder %s41_s2, 0 }
  0xa3   : > { %p52_p3 = scmp.eq.s32.totalorder %s2489_s24, 0  ;;  %p57_p11 = scmp.ne.s32.totalorder %s2481_s22, %s2477_s21 }
  0xa4   : > { %p406_p12 = scmp.eq.s32.totalorder %s2612_s27, 1  ;;  %p3059_p0 = scmp.eq.s32.totalorder %s2612_s27, 0 }
  0xa5   : > { %s2769_s7 = scalar_select %p42_p1, %s2485_s23, %s44_s5  }
  0xa6   : > { %p53_p13 = por %p52_p3, %p51_p8  ;;  %p2773_p2 = por %p3059_p0, %p57_p11 }
  0xa7   : > { %p2777_p6 = por %p406_p12, %p51_p8  ;;  %p412_p5 = scmp.eq.s32.totalorder %s1802_s0, 1 }
  0xa8   : > { %s3060_s13 = scalar_select %p2773_p2, 1, 0 }
  0xa9   : > { %s3061_s30 = scalar_select %p2777_p6, 1, 0 }
  0xaa   : > { %p2088_p7 = scmp.lt.s32.totalorder %s2489_s24, 2  ;;  %s2783_s20 = sand.u32 1, %s2485_s23  }
  0xab   : > { %p2785_p9 = por %p412_p5, %p57_p11  ;;  %s1810_s25 = sshll.u32 %s2783_s20, 3 }
  0xac   : > { %s1811_s17 = sshll.u32 %s2489_s24, 7  ;;  %s3063_s9 = sld [smem:[#allocation21_spill]] }
  0xad   : > { %s3062_s19 = scalar_select %p2785_p9, 1, 0 }
  0xae   : > { %s525_s11 = scalar_lea.vmem [#allocation2], %s1810_s25  ;;  %p2796_p4 = pnand %p2088_p7, %p53_p13 }
  0xaf   : > { %s532_s18 = sshll.u32 %s525_s11, 4  ;;  %s522_s2 = scalar_lea.sflag [#allocation3], %s2783_s20  ;;  %s2800_s18 = int_to_ptr.vmem [resolvable:$true] %s532_s18 }
  0xb0   : > { %p2349_p8 = pneg %p2796_p4 }
  0xb2   : > { %s2794_s16 = scalar_lea.hbm %s3063_s9, %s1811_s17  ;;  %s2352_s15 = scalar_lea.hbm %s3063_s9, 256 }
  0xb3   : > { %s2347_s8 = scalar_lea.hbm %s2794_s16, 128  ;;  %p2353_p11 = scmp.lt.u32.totalorder %s2794_s16, %s3063_s9 }
  0xb4   : > { %p2348_p10 = scmp.ne.s32.totalorder %s2794_s16, %s2347_s8  ;;  %p2354_p12 = scmp.lt.u32.totalorder %s2352_s15, %s2347_s8 }
  0xb5   : > { %p2356_p0 = scmp.lt.u32.totalorder %s2347_s8, %s2794_s16 }
  0xb6   : > { %p2350_p1 = pnand %p2349_p8, %p2348_p10  ;;  %p2355_p13 = por %p2354_p12, %p2353_p11 }
  0xb8   : > { %p2351_p3 = pneg %p2350_p1  ;;  %p2357_p5 = por %p2356_p0, %p2355_p13 }
  0xba   : > { %p2358_p7 = pnand %p2357_p5, %p2351_p3 }
  0xbc   : > { %2361 = shalt.err (!%p2358_p7)
}
  0xbd   : > { %s2362_s5 = scalar_lea.vmem %s2800_s18, 128  ;;  %s2500_s25 = smov [#allocation2]  }
  0xbe   : > { %p2363_p10 = scmp.ne.s32.totalorder %s2800_s18, %s2362_s5  ;;  %s2367_s17 = sshll.u32 %s2500_s25, 4  ;;  %s2368_s17 = int_to_ptr.vmem [resolvable:$false] %s2367_s17 }
  0xbf   : > { %s2369_s26 = scalar_lea.vmem %s2368_s17, 256  ;;  %p2370_p6 = scmp.lt.s32.totalorder %s2800_s18, %s2368_s17 }
  0xc0   : > { %p2365_p1 = pnand %p2363_p10, %p2349_p8  ;;  %p2371_p11 = scmp.lt.s32.totalorder %s2369_s26, %s2362_s5 }
  0xc2   : > { %p2366_p9 = pneg %p2365_p1  ;;  %p2372_p12 = por %p2371_p11, %p2370_p6 }
  0xc4   : > { %p2373_p13 = pnand %p2372_p12, %p2366_p9 }
  0xc6   : > { %2376 = shalt.err (!%p2373_p13)
}
  0xc7   : > { %2075 = dma.hbm_to_vmem [thread:$0]  (!%p2796_p4), %s2794_s16, 128, %s2800_s18, %s522_s2  }
  0xc8   : > { %s1812_s8 = sshll.u32 %s2783_s20, 2  ;;  %s1813_s15 = sshll.u32 %s2489_s24, 6 }
  0xc9   : > { %s2834_s9 = scalar_lea.hbm %s3013_s1, %s1813_s15  ;;  %s543_s5 = scalar_lea.vmem [#allocation5], %s1812_s8 }
  0xca   : > { %s550_s17 = sshll.u32 %s543_s5, 4  ;;  %s3065_s26 = sand.u32 1, %s2489_s24   ;;  %s551_s17 = int_to_ptr.vmem [resolvable:$true] %s550_s17 }
  0xcb   : > { %s540_s10 = scalar_lea.sflag [#allocation6], %s3065_s26  ;;  %s2377_s12 = scalar_lea.hbm %s2834_s9, 64 }
  0xcc   : > { %p2378_p6 = scmp.ne.s32.totalorder %s2834_s9, %s2377_s12  ;;  %s2382_s18 = scalar_lea.hbm %s3013_s1, 128 }
  0xcd   : > { %p2383_p0 = scmp.lt.u32.totalorder %s2834_s9, %s3013_s1  ;;  %p2384_p5 = scmp.lt.u32.totalorder %s2382_s18, %s2377_s12 }
  0xce   : > { %p2380_p9 = pnand %p2378_p6, %p2349_p8  ;;  %p2386_p10 = scmp.lt.u32.totalorder %s2377_s12, %s2834_s9 }
  0xcf   : > { %p2385_p7 = por %p2384_p5, %p2383_p0 }
  0xd0   : > { %p2381_p3 = pneg %p2380_p9 }
  0xd1   : > { %p2387_p1 = por %p2386_p10, %p2385_p7 }
  0xd3   : > { %p2388_p11 = pnand %p2387_p1, %p2381_p3 }
  0xd5   : > { %2391 = shalt.err (!%p2388_p11)
}
  0xd6   : > { %s2392_s8 = scalar_lea.vmem %s551_s17, 64  ;;  %s2501_s11 = smov [#allocation5]  }
  0xd7   : > { %p2393_p12 = scmp.ne.s32.totalorder %s551_s17, %s2392_s8  ;;  %s2397_s25 = sshll.u32 %s2501_s11, 4  ;;  %s2398_s25 = int_to_ptr.vmem [resolvable:$false] %s2397_s25 }
  0xd8   : > { %s2399_s5 = scalar_lea.vmem %s2398_s25, 128  ;;  %p2400_p9 = scmp.lt.s32.totalorder %s551_s17, %s2398_s25 }
  0xd9   : > { %p2395_p13 = pnand %p2393_p12, %p2349_p8  ;;  %p2401_p2 = scmp.lt.s32.totalorder %s2399_s5, %s2392_s8 }
  0xdb   : > { %p2396_p6 = pneg %p2395_p13  ;;  %p2402_p0 = por %p2401_p2, %p2400_p9 }
  0xdd   : > { %p2403_p5 = pnand %p2402_p0, %p2396_p6 }
  0xdf   : > { %2406 = shalt.err (!%p2403_p5)
}
  0xe0   : > { %2078 = dma.hbm_to_vmem [thread:$0]  (!%p2796_p4), %s2834_s9, 64, %s551_s17, %s540_s10  }
  0xe1   : > { %p3066_p3 = scmp.ne.s32.totalorder %s3051_s28, 0 }
  0xe2   : > { %s2860_s12 = sand.u32 (!%p3066_p3), 1, %s2481_s22   ;;  %p3067_p8 = scmp.ne.s32.totalorder (!%p3066_p3), %s3060_s13, 0 }
  0xe3   : > { %565 = sbr.rel (%p3066_p3) target bundleno = 2212 (0x8a4), region = 84  ;;  %s1815_s26 = sshll.u32 (!%p3066_p3), %s2860_s12, 3 }
  0xe4   : > { %s568_s20 = scalar_lea.sflag (!%p3066_p3), [#allocation3], %s2860_s12  ;;  %s571_s16 = scalar_lea.vmem (!%p3066_p3), [#allocation2], %s1815_s26 }
  0xea   : > { %2452 = dma.done.wait (%p3067_p8), %s568_s20, 128  }
  0xeb   : > { %2454 = vsyncadd (%p3067_p8), %s568_s20, 4294967168  ;;  %s576_s10 = sand.u32 1, %s2612_s27   ;;  %s1816_s28 = sshll.u32 %s2860_s12, 2 }
  0xec   : > { %s577_s9 = scalar_lea.sflag [#allocation6], %s576_s10  ;;  %s580_s0 = scalar_lea.vmem [#allocation5], %s1816_s28 }
  0xed   : > { %2456 = dma.done.wait (%p3067_p8), %s577_s9, 64  }
  0xee   : > { %2458 = vsyncadd (%p3067_p8), %s577_s9, 4294967232  ;;  %p3068_p2 = scmp.eq.s32.totalorder %s2612_s27, 0 }
  0xf0   : > { %2460 = dma.done.wait (%p3068_p2), [#allocation6], 1024   ;;  %p3069_p4 = pmov %p3068_p2 }
  0xf1   : > { %p3070_p7 = pmov %p3068_p2 }
  0xf2   : > { %2462 = vsyncadd (%p3069_p4), [#allocation6], 4294966272 }
  0xf3   : > { %2464 = dma.done.wait (%p3070_p7), [#allocation9], 4096   ;;  %p3071_p10 = pmov %p3068_p2 }
  0xf4   : > { %p3072_p1 = pmov %p3068_p2 }
  0xf5   : > { %2466 = vsyncadd (%p3071_p10), [#allocation9], 4294963200 }
  0xf6   : > { %2468 = dma.done.wait (%p3072_p1), [#allocation12], 2048   ;;  %p3073_p11 = pmov %p3072_p1 }
  0xf7   : > { %v2502_v0 = vmov 0.0   ;;  %vm2503_vm0 = vmmov 0   ;;  %v661_v1 = vld [vmem:[%s580_s0] sm:$0xf]  ;;  %v660_v2 = vld [vmem:[%s571_s16] sm:$0xff]  ;;  %vm664_vm1 = vcmask 64512  }
  0xf8   : > { %2470 = vsyncadd (%p3073_p11), [#allocation12], 4294965248  ;;  %1949 = vmatprep.subr.mxu1 %v2502_v0  ;;  %1951 = vmatprep.mubr.msk.f32.mxu1 %vm2503_vm0, %v2502_v0  ;;  %v662_v3 = vunpack.c.l.bf16 %v661_v1  ;;  %v2139_v4 = vld [vmem:[%s3015_s3] sm:$0xff]   ;;  %vm754_vm2 = vcmask 130048   ;;  %v2140_v15 = vld [vmem:[#allocation7] sm:$0xff]   ;;  %s3074_s5 = sld [smem:[#allocation26_spill]] }
  0xf9   : > { %v1823_v8 = vld [vmem:[%s3016_s4] ss:$0 sm:$0xff]  ;;  %v2142_v17 = vld [vmem:[#allocation7 + $0x10] sm:$0xff]   ;;  %v2143_v18 = vld [vmem:[#allocation7 + $0x18] sm:$0xff]   ;;  %s3075_s16 = sld [smem:[#allocation24_spill]]  ;;  %vm1208_vm3 = vcmask 1044480  }
  0xfa   : > { %1950 = vmatpush3.msra.mxu1 %v662_v3  ;;  %v2141_v16 = vld [vmem:[#allocation7 + $0x8] sm:$0xff]   ;;  %v2144_v19 = vld [vmem:[#allocation7 + $0x20] sm:$0xff]   ;;  %v2146_v21 = vld [vmem:[#allocation7 + $0x30] sm:$0xff]   ;;  %p656_p12 = scmp.lt.s32.totalorder %s2612_s27, 1  ;;  %s3076_s17 = sld [smem:[#allocation22_spill]]  ;;  %v2504_v53 = vmov 0  }
  0xfb   : > { %1952 = vmatmul.mubr.msk.f32.vlgmr.msra.gmra.mrb[0].mxu1 %vm664_vm1, %v660_v2  ;;  %1954 = vmatprep.subr.bf16.mxu1 %v2502_v0  ;;  %v2145_v20 = vld [vmem:[#allocation7 + $0x28] sm:$0xff]   ;;  %v2147_v22 = vld [vmem:[#allocation7 + $0x38] sm:$0xff]   ;;  %vm1204_vm4 = vcmask 80896   ;;  %v2175_v55 = vld [vmem:[#allocation10 + $0x40] sm:$0xff]   ;;  %s3077_s8 = sld [smem:[#allocation28_spill]]  ;;  %s3078_s26 = sld [smem:[#allocation30_spill]] }
  0xfc   : > { %1956 = vmatprep.mubr.msk.bf16.mxu1 %vm2503_vm0, %v2502_v0  ;;  %1955 = vmatpush3.bf16.msra.mxu1 %v2139_v4  ;;  %v2148_v26 = vld [vmem:[#allocation8 + $0x4] ss:$8 sps:$4 sm:$0xff]   ;;  %v2150_v27 = vld [vmem:[#allocation8] ss:$8 sps:$4 sm:$0xff]   ;;  %v2151_v28 = vld [vmem:[#allocation8 + $0x14] ss:$8 sps:$4 sm:$0xff]  }
  0xfd   : > { %1960 = vmatprep.subr.mxu1 %v2502_v0  ;;  %1153 = vmatprep.subr.bf16.mxu0 %v2148_v26  ;;  %v2153_v29 = vld [vmem:[#allocation8 + $0x10] ss:$8 sps:$4 sm:$0xff]   ;;  %v2154_v30 = vld [vmem:[#allocation8 + $0x24] ss:$8 sps:$4 sm:$0xff]   ;;  %v2156_v31 = vld [vmem:[#allocation8 + $0x20] ss:$8 sps:$4 sm:$0xff]  }
  0xfe   : > { %1154 = vmatpush1.bf16.msra.mxu0 %v2150_v27  ;;  %v2157_v32 = vld [vmem:[#allocation8 + $0x34] ss:$8 sps:$4 sm:$0xff]   ;;  %v2159_v33 = vld [vmem:[#allocation8 + $0x30] ss:$8 sps:$4 sm:$0xff]   ;;  %v2160_v34 = vld [vmem:[#allocation8 + $0x44] ss:$8 sps:$4 sm:$0xff]   ;;  %1185 = vmatprep.mubr.bf16.mxu0 %v2504_v53 }
  0xff   : > { %1155 = vmatprep.subr.bf16.mxu0 %v2151_v28  ;;  %v2162_v35 = vld [vmem:[#allocation8 + $0x40] ss:$8 sps:$4 sm:$0xff]   ;;  %v2163_v36 = vld [vmem:[#allocation8 + $0x54] ss:$8 sps:$4 sm:$0xff]   ;;  %v2165_v37 = vld [vmem:[#allocation8 + $0x50] ss:$8 sps:$4 sm:$0xff]  }
 0x100   : > { %v2166_v38 = vld [vmem:[#allocation8 + $0x64] ss:$8 sps:$4 sm:$0xff]   ;;  %v2168_v39 = vld [vmem:[#allocation8 + $0x60] ss:$8 sps:$4 sm:$0xff]   ;;  %v2169_v40 = vld [vmem:[#allocation8 + $0x74] ss:$8 sps:$4 sm:$0xff]  }
 0x101   : > { %v1827_v41 = vld [vmem:[%s3018_s6] ss:$0 sm:$0xff]  ;;  %v2171_v46 = vld [vmem:[%s3074_s5 + $0x4] ss:$8 sps:$4 sm:$0x1f]   ;;  %s657_s9 = scalar_select %p656_p12, %s2612_s27, 1 }
 0x102   : > { %1156 = vmatpush1.bf16.msra.mxu0 %v2153_v29  ;;  %v982_v49 = vld [vmem:[%s3075_s16] sm:$0x1]  ;;  %v2173_v52 = vld [vmem:[#allocation8 + $0x70] ss:$8 sps:$4 sm:$0xff]   ;;  %v2176_v57 = vld [vmem:[#allocation10] sm:$0xff]   ;;  %s3079_s10 = sld [smem:[#allocation31_spill]] }
 0x103   : > { %1157 = vmatprep.subr.bf16.mxu0 %v2154_v30  ;;  %v2174_v50 = vld [vmem:[%s3074_s5] ss:$8 sps:$4 sm:$0x1f]   ;;  %s658_s18 = scalar_lea.vmem %s3076_s17, %s657_s9  ;;  %v2181_v1 = vld [vmem:[#allocation10 + $0x58] sm:$0xff]   ;;  %v2183_v3 = vld [vmem:[#allocation10 + $0x60] sm:$0xff]   ;;  %s1889_s28 = sshll.u32 %s2612_s27, 4 }
 0x104   : > { %v1210_v51 = vsel %vm1208_vm3, %v2174_v50, 0  ;;  %v663_v54 = vld [vmem:[%s658_s18] sm:$0x1]  ;;  %v2179_v62 = vld [vmem:[#allocation10 + $0x50] sm:$0xff]   ;;  %v2184_v4 = vld [vmem:[#allocation10 + $0x20] sm:$0xff]   ;;  %s655_s9 = scalar_lea.vmem [#allocation14], %s2860_s12 }
 0x105   : > { %v2177_v60 = vld [vmem:[#allocation10 + $0x48] sm:$0xff]   ;;  %v2180_v63 = vld [vmem:[#allocation10 + $0x10] sm:$0xff]   ;;  %v2198_v30 = vld [vmem:[#allocation11 + $0x38] sm:$0xff]   ;;  %s1657_s0 = sshll.u32 %s655_s9, 4  ;;  %s3080_s18 = sld [smem:[#allocation32_spill]]  ;;  %s2970_s0 = int_to_ptr.vmem [resolvable:$true] %s1657_s0 }
 0x106   : > { %1158 = vmatpush1.bf16.msra.mxu0 %v2156_v31  ;;  %v2178_v61 = vld [vmem:[#allocation10 + $0x8] sm:$0xff]   ;;  %v2197_v29 = vld [vmem:[#allocation11 + $0x30] sm:$0xff]   ;;  %v2199_v31 = vld [vmem:[#allocation13] sm:$0xff]   ;;  %s1645_s15 = scalar_lea.sflag [#allocation4], %s2860_s12  ;;  %s2407_s27 = scalar_lea.vmem %s2970_s0, 16 }
 0x107   : > { %1159 = vmatprep.subr.bf16.mxu0 %v2157_v32  ;;  %v2200_v32 = vld [vmem:[#allocation13 + $0x8] sm:$0xff]   ;;  %p2408_p13 = scmp.ne.s32.totalorder %s2970_s0, %s2407_s27  ;;  %p3081_p6 = scmp.ne.s32.totalorder %s3061_s30, 0 }
 0x109   : > { %p2409_p9 = pnand %p2408_p13, %p3081_p6 }
 0x10a   : > { %1160 = vmatpush1.bf16.msra.mxu0 %v2159_v33  ;;  %v2201_v33 = vld [vmem:[#allocation13 + $0x10] sm:$0xff]  }
 0x10b   : > { %1161 = vmatprep.subr.bf16.mxu0 %v2160_v34  ;;  %v2202_v34 = vld [vmem:[#allocation13 + $0x18] sm:$0xff]   ;;  %s2968_s2 = scalar_lea.hbm %s3080_s18, %s1889_s28  ;;  %p2410_p0 = pneg %p2409_p9 }
 0x10e   : > { %1162 = vmatpush1.bf16.msra.mxu0 %v2162_v35  ;;  %v2203_v35 = vld [vmem:[#allocation13 + $0x20] sm:$0xff]  }
 0x10f   : > { %1163 = vmatprep.subr.bf16.mxu0 %v2163_v36  ;;  %v2204_v36 = vld [vmem:[#allocation13 + $0x28] sm:$0xff]  }
 0x112   : > { %1164 = vmatpush1.bf16.msra.mxu0 %v2165_v37 }
 0x113   : > { %1165 = vmatprep.subr.bf16.mxu0 %v2166_v38  ;;  %v1292_v38 = vld [vmem:[%s3077_s8] sm:$0x1]  ;;  %s2505_s8 = smov [#allocation14]  }
 0x114   : > { %s2411_s11 = sshll.u32 %s2505_s8, 4  ;;  %s2412_s11 = int_to_ptr.vmem [resolvable:$false] %s2411_s11 }
 0x115   : > { %s2413_s25 = scalar_lea.vmem %s2412_s11, 32  ;;  %p2414_p5 = scmp.lt.s32.totalorder %s2970_s0, %s2412_s11 }
 0x116   : > { %1166 = vmatpush1.bf16.msra.mxu0 %v2168_v39  ;;  %p2415_p3 = scmp.lt.s32.totalorder %s2413_s25, %s2407_s27 }
 0x117   : > { %1167 = vmatprep.subr.bf16.mxu0 %v2169_v40 }
 0x118   : > { %p2416_p8 = por %p2415_p3, %p2414_p5 }
 0x11a   : > { %1168 = vmatpush1.bf16.msra.mxu0 %v2173_v52  ;;  %p2417_p2 = pnand %p2416_p8, %p2410_p0 }
 0x11b   : > { %1909 = vmatprep.subr.bf16.mxu0 %v2175_v55 }
 0x1ce   : > { %v734_v5 = vpop.f32.mrb[0].mxu1 }
 0x1cf   : > { %v738_v6 = vpack.c.bf16 %v734_v5, %v734_v5  ;;  %v1953_v7 = vpop.f32.mrb[1].mxu1  ;;  %v2185_v5 = vld [vmem:[#allocation10 + $0x68] sm:$0xff]  }
 0x1d0   : > { %v2187_v7 = vld [vmem:[#allocation10 + $0x70] sm:$0xff]  }
 0x1d1   : > { %1957 = vmatmul.mubr.msk.bf16.vlgmr.msra.gmra.mrb[4].mxu1 %vm754_vm2, %v738_v6  ;;  %v2186_v6 = vld [vmem:[#allocation10 + $0x28] sm:$0xff]  }
 0x1d2   : > { %1962 = vmatprep.mubr.msk.f32.mxu1 %vm2503_vm0, %v2502_v0 }
 0x2a4   : > { %v792_v9 = vpop.f32.mrb[4].mxu1 }
 0x2a5   : > { %v793_v10 = vadd.f32 %v1823_v8, %v792_v9  ;;  %v1958_v11 = vpop.f32.mrb[5].mxu1  ;;  %v2188_v9 = vld [vmem:[#allocation10 + $0x30] sm:$0xff]  }
 0x2a6   : > { %v795_v12 = vpop.f32.mrb[6].mxu1 }
 0x2a7   : > { %v798_v13 = vmax.f32 %v793_v10, 0.0  ;;  %v1959_v14 = vpop.f32.mrb[7].mxu1 }
 0x2a8   : > { %v2190_v14 = vld [vmem:[#allocation10 + $0x38] sm:$0xff]  }
 0x2a9   : > { %1961 = vmatpush3.msra.mxu1 %v798_v13  ;;  %v2189_v13 = vld [vmem:[#allocation10 + $0x78] sm:$0xff]  }
 0x2aa   : > { %1963 = vmatmul.mubr.msk.f32.vlgmr.msra.gmra.mrb[2].mxu1 %vm664_vm1, %v660_v2  ;;  %1965 = vmatprep.subr.bf16.mxu1 %v2502_v0  ;;  %v2182_v2 = vld [vmem:[#allocation10 + $0x18] sm:$0xff]  }
 0x2ab   : > { %1966 = vmatpush3.bf16.msra.mxu1 %v2140_v15  ;;  %1981 = vmatprep.mubr.msk.bf16.mxu1 %vm2503_vm0, %v2502_v0  ;;  %v2191_v15 = vld [vmem:[#allocation11] sm:$0xff]  }
 0x2ac   : > { %1967 = vmatprep.subr.bf16.mxu1 %v2502_v0 }
 0x2af   : > { %1968 = vmatpush3.bf16.msra.mxu1 %v2141_v16  ;;  %v2192_v16 = vld [vmem:[#allocation11 + $0x8] sm:$0xff]  }
 0x2b0   : > { %1969 = vmatprep.subr.bf16.mxu1 %v2502_v0 }
 0x2b3   : > { %1970 = vmatpush3.bf16.msra.mxu1 %v2142_v17  ;;  %v2193_v17 = vld [vmem:[#allocation11 + $0x10] sm:$0xff]  }
 0x2b4   : > { %1971 = vmatprep.subr.bf16.mxu1 %v2502_v0 }
 0x2b7   : > { %1972 = vmatpush3.bf16.msra.mxu1 %v2143_v18  ;;  %v2194_v18 = vld [vmem:[#allocation11 + $0x18] sm:$0xff]  }
 0x2b8   : > { %1973 = vmatprep.subr.bf16.mxu1 %v2502_v0 }
 0x2bb   : > { %1974 = vmatpush3.bf16.msra.mxu1 %v2144_v19  ;;  %v2195_v19 = vld [vmem:[#allocation11 + $0x20] sm:$0xff]  }
 0x2bc   : > { %1975 = vmatprep.subr.bf16.mxu1 %v2502_v0 }
 0x2bf   : > { %1976 = vmatpush3.bf16.msra.mxu1 %v2145_v20  ;;  %v2196_v20 = vld [vmem:[#allocation11 + $0x28] sm:$0xff]  }
 0x2c0   : > { %1977 = vmatprep.subr.bf16.mxu1 %v2502_v0 }
 0x2c3   : > { %1978 = vmatpush3.bf16.msra.mxu1 %v2146_v21 }
 0x2c4   : > { %1979 = vmatprep.subr.bf16.mxu1 %v2502_v0 }
 0x2c7   : > { %1980 = vmatpush3.bf16.msra.mxu1 %v2147_v22 }
 0x2c8   : > { %1985 = vmatprep.subr.mxu1 %v2502_v0 }
 0x37d   : > { %v865_v23 = vpop.f32.mrb[2].mxu1 }
 0x37e   : > { %v869_v24 = vpack.c.bf16 %v865_v23, %v865_v23  ;;  %v1964_v25 = vpop.f32.mrb[3].mxu1 }
 0x380   : > { %1982 = vmatmul.mubr.bf16.vlgmr.msra.gmra.mrb[8].mxu1 %v869_v24 }
 0x381   : > { %1987 = vmatprep.mubr.msk.f32.mxu1 %vm2503_vm0, %v2502_v0 }
 0x453   : > { %v975_v42 = vpop.f32.mrb[8].mxu1 }
 0x454   : > { %v976_v43 = vadd.f32 %v1827_v41, %v975_v42  ;;  %v1983_v44 = vpop.f32.mrb[9].mxu1 }
 0x455   : > { %v978_v45 = vpop.f32.mrb[10].mxu1 }
 0x456   : > { %v981_v47 = vmax.f32 %v976_v43, 0.0  ;;  %v1984_v48 = vpop.f32.mrb[11].mxu1 }
 0x457   : > { %v1447_v48 = vld [vmem:[%s3078_s26] sm:$0x1] }
 0x458   : > { %1986 = vmatpush3.msra.mxu1 %v981_v47  ;;  %v2206_v47 = vld [vmem:[#allocation13 + $0x38] sm:$0xff]  }
 0x459   : > { %1988 = vmatmul.mubr.msk.f32.vlgmr.msra.gmra.mrb[12].mxu1 %vm664_vm1, %v982_v49  ;;  %1855 = vmatprep.subr.msk.bf16.mxu1 %vm1208_vm3, %v2171_v46  ;;  %v2205_v46 = vld [vmem:[#allocation13 + $0x30] sm:$0xff]  }
 0x45a   : > { %1216 = vmatpush1.bf16.msra.mxu1 %v1210_v51  ;;  %1247 = vmatprep.mubr.bf16.mxu1 %v2504_v53 }
 0x45b   : > { %1990 = vmatprep.subr.bf16.mxu1 %v2502_v0 }
 0x45d   : > { %1856 = vmatmul.mubr.msk.bf16.vlgmr.msra.gmra.mrb[16].mxu1 %vm1204_vm4, %v663_v54 }
 0x45e   : > { %2006 = vmatprep.mubr.msk.bf16.mxu1 %vm2503_vm0, %v2502_v0  ;;  %1991 = vmatpush3.bf16.msra.mxu1 %v2191_v15 }
 0x45f   : > { %1992 = vmatprep.subr.bf16.mxu1 %v2502_v0 }
 0x462   : > { %1993 = vmatpush3.bf16.msra.mxu1 %v2192_v16 }
 0x463   : > { %1994 = vmatprep.subr.bf16.mxu1 %v2502_v0 }
 0x466   : > { %1995 = vmatpush3.bf16.msra.mxu1 %v2193_v17 }
 0x467   : > { %1996 = vmatprep.subr.bf16.mxu1 %v2502_v0 }
 0x46a   : > { %1997 = vmatpush3.bf16.msra.mxu1 %v2194_v18 }
 0x46b   : > { %1998 = vmatprep.subr.bf16.mxu1 %v2502_v0 }
 0x46e   : > { %1999 = vmatpush3.bf16.msra.mxu1 %v2195_v19 }
 0x46f   : > { %2000 = vmatprep.subr.bf16.mxu1 %v2502_v0 }
 0x472   : > { %2001 = vmatpush3.bf16.msra.mxu1 %v2196_v20 }
 0x473   : > { %2002 = vmatprep.subr.bf16.mxu1 %v2502_v0 }
 0x476   : > { %2003 = vmatpush3.bf16.msra.mxu1 %v2197_v29 }
 0x477   : > { %2004 = vmatprep.subr.bf16.mxu1 %v2502_v0 }
 0x47a   : > { %2005 = vmatpush3.bf16.msra.mxu1 %v2198_v30 }
 0x52c   : > { %v1052_v56 = vpop.f32.mrb[12].mxu1 }
 0x52d   : > { %v1056_v58 = vpack.c.bf16 %v1052_v56, %v1052_v56  ;;  %v1989_v59 = vpop.f32.mrb[13].mxu1 }
 0x52f   : > { %1186 = vmatmul.mubr.bf16.vlgmr.msra.gmra.mrb[0].mxu0 %v1056_v58 }
 0x530   : > { %1910 = vmatpush3.bf16.msra.mxu0 %v2176_v57  ;;  %v1249_v8 = vpop.f32.mrb[16].mxu1 }
 0x531   : > { %1911 = vmatprep.subr.bf16.mxu0 %v2177_v60  ;;  %v1251_v10 = vpop.f32.mrb[17].mxu1 }
 0x532   : > { %v1253_v11 = vpop.f32.mrb[18].mxu1 }
 0x533   : > { %v1254_v12 = vpop.f32.mrb[19].mxu1 }
 0x534   : > { %1912 = vmatpush3.bf16.msra.mxu0 %v2178_v61 }
 0x535   : > { %1913 = vmatprep.subr.bf16.mxu0 %v2179_v62 }
 0x538   : > { %1914 = vmatpush3.bf16.msra.mxu0 %v2180_v63 }
 0x539   : > { %1915 = vmatprep.subr.bf16.mxu0 %v2181_v1 }
 0x53c   : > { %1916 = vmatpush3.bf16.msra.mxu0 %v2182_v2 }
 0x53d   : > { %1917 = vmatprep.subr.bf16.mxu0 %v2183_v3 }
 0x540   : > { %1918 = vmatpush3.bf16.msra.mxu0 %v2184_v4 }
 0x541   : > { %1919 = vmatprep.subr.bf16.mxu0 %v2185_v5 }
 0x544   : > { %1920 = vmatpush3.bf16.msra.mxu0 %v2186_v6 }
 0x545   : > { %1921 = vmatprep.subr.bf16.mxu0 %v2187_v7 }
 0x548   : > { %1922 = vmatpush3.bf16.msra.mxu0 %v2188_v9 }
 0x549   : > { %1923 = vmatprep.subr.bf16.mxu0 %v2189_v13 }
 0x54c   : > { %1924 = vmatpush3.bf16.msra.mxu0 %v2190_v14 }
 0x54d   : > { %2010 = vmatprep.subr.bf16.mxu0 %v2502_v0 }
 0x602   : > { %v1187_v21 = vpop.f32.mrb[0].mxu0 }
 0x603   : > { %v1256_v22 = vmul.f32 %v1249_v8, %v1187_v21  ;;  %v1189_v23 = vpop.f32.mrb[1].mxu0 }
 0x604   : > { %v1257_v24 = vmul.f32 %v1251_v10, %v1189_v23  ;;  %v1191_v25 = vpop.f32.mrb[2].mxu0 }
 0x605   : > { %v1192_v26 = vpop.f32.mrb[3].mxu0  ;;  %v1258_v28 = vpack.c.bf16 %v1256_v22, %v1256_v22 }
 0x606   : > { %v1259_v27 = vpack.c.bf16 %v1257_v24, %v1257_v24 }
 0x608   : > { %1421 = vmatprep.mubr.bf16.mxu0 %v1259_v27 }
 0x609   : > { %1422 = vmatmul.mubr.bf16.vlgmr.msra.gmra.mrb[4].mxu0 %v1258_v28 }
 0x60a   : > { %2026 = vmatprep.mubr.msk.bf16.mxu0 %vm2503_vm0, %v2502_v0  ;;  %2011 = vmatpush3.bf16.msra.mxu0 %v2199_v31 }
 0x60b   : > { %2012 = vmatprep.subr.bf16.mxu0 %v2502_v0 }
 0x60e   : > { %2013 = vmatpush3.bf16.msra.mxu0 %v2200_v32 }
 0x60f   : > { %2014 = vmatprep.subr.bf16.mxu0 %v2502_v0 }
 0x612   : > { %2015 = vmatpush3.bf16.msra.mxu0 %v2201_v33 }
 0x613   : > { %2016 = vmatprep.subr.bf16.mxu0 %v2502_v0 }
 0x616   : > { %2017 = vmatpush3.bf16.msra.mxu0 %v2202_v34 }
 0x617   : > { %2018 = vmatprep.subr.bf16.mxu0 %v2502_v0 }
 0x61a   : > { %2019 = vmatpush3.bf16.msra.mxu0 %v2203_v35 }
 0x61b   : > { %2020 = vmatprep.subr.bf16.mxu0 %v2502_v0 }
 0x61e   : > { %2021 = vmatpush3.bf16.msra.mxu0 %v2204_v36 }
 0x61f   : > { %2022 = vmatprep.subr.bf16.mxu0 %v2502_v0 }
 0x622   : > { %2023 = vmatpush3.bf16.msra.mxu0 %v2205_v46 }
 0x623   : > { %2024 = vmatprep.subr.bf16.mxu0 %v2502_v0  ;;  %v1554_v0 = vld [vmem:[%s3079_s10] sm:$0x1] }
 0x626   : > { %2025 = vmatpush3.bf16.msra.mxu0 %v2206_v47 }
 0x6dc   : > { %v1925_v37 = vpop.f32.mrb[4].mxu0 }
 0x6dd   : > { %v1926_v39 = vpop.f32.mrb[5].mxu0 }
 0x6de   : > { %v1927_v40 = vadd.f32 %v1926_v39, %v1925_v37  ;;  %v1928_v41 = vpop.f32.mrb[6].mxu0 }
 0x6df   : > { %v1929_v42 = vpop.f32.mrb[7].mxu0 }
 0x6e0   : > { %v1424_v43 = vadd.f32 %v1927_v40, %v1292_v38 }
 0x6e2   : > { %v1429_v44 = vmax.f32 %v1424_v43, 0.0 }
 0x6e4   : > { %v1430_v45 = vpack.c.bf16 %v1429_v44, %v1429_v44 }
 0x6e6   : > { %2007 = vmatmul.mubr.bf16.vlgmr.msra.gmra.mrb[20].mxu1 %v1430_v45 }
 0x7b9   : > { %v1530_v49 = vpop.f32.mrb[20].mxu1 }
 0x7ba   : > { %v1531_v50 = vadd.f32 %v1530_v49, %v1447_v48  ;;  %v2008_v51 = vpop.f32.mrb[21].mxu1 }
 0x7bb   : > { %v1533_v52 = vpop.f32.mrb[22].mxu1 }
 0x7bc   : > { %v1536_v53 = vmax.f32 %v1531_v50, 0.0  ;;  %v2009_v54 = vpop.f32.mrb[23].mxu1 }
 0x7be   : > { %v1537_v55 = vpack.c.bf16 %v1536_v53, %v1536_v53 }
 0x7c0   : > { %2027 = vmatmul.mubr.bf16.vlgmr.msra.gmra.mrb[8].mxu0 %v1537_v55 }
 0x893   : > { %v1637_v56 = vpop.f32.mrb[8].mxu0 }
 0x894   : > { %v1638_v57 = vadd.f32 %v1637_v56, %v1554_v0  ;;  %v2028_v58 = vpop.f32.mrb[9].mxu0 }
 0x895   : > { %v1640_v59 = vpop.f32.mrb[10].mxu0 }
 0x896   : > { %1643 = vst [vmem:[%s655_s9] sm:$0x1] %v1638_v57  ;;  %v2029_v60 = vpop.f32.mrb[11].mxu0 }
 0x897   : > { %2420 = shalt.err (!%p2417_p2)
}
 0x898   : > { %s2421_s12 = scalar_lea.hbm %s2968_s2, 16  ;;  %s2425_s16 = scalar_lea.hbm %s3080_s18, 32 }
 0x899   : > { %p2422_p4 = scmp.ne.s32.totalorder %s2968_s2, %s2421_s12  ;;  %p2426_p1 = scmp.lt.u32.totalorder %s2968_s2, %s3080_s18 }
 0x89a   : > { %p2427_p11 = scmp.lt.u32.totalorder %s2425_s16, %s2421_s12  ;;  %p2429_p13 = scmp.lt.u32.totalorder %s2421_s12, %s2968_s2 }
 0x89b   : > { %p2423_p7 = pnand %p2422_p4, %p3081_p6 }
 0x89c   : > { %p2428_p12 = por %p2427_p11, %p2426_p1 }
 0x89d   : > { %p2424_p10 = pneg %p2423_p7 }
 0x89e   : > { %p2430_p9 = por %p2429_p13, %p2428_p12 }
 0x8a0   : > { %p2431_p0 = pnand %p2430_p9, %p2424_p10 }
 0x8a2   : > { %2434 = shalt.err (!%p2431_p0)
}
 0x8a3   : > { %2054 = dma.vmem_to_hbm [thread:$0]  (%p3081_p6), %s2970_s0, 16, %s2968_s2, %s1645_s15  }
 0x8a4 PF: > { %s1669_s9 = sand.u32 1, %s2477_s21   ;;  %p3082_p5 = scmp.ne.s32.totalorder %s3062_s19, 0 }
 0x8a5   : > { %p3083_p3 = scmp.ge.s32.totalorder %s2489_s24, 2  ;;  %s1670_s13 = scalar_lea.sflag [#allocation4], %s1669_s9 }
 0x8a7   : > { %p2080_p8 = pnand %p3083_p3, %p3082_p5 }
 0x8a9   : > { %2472 = dma.done.wait (!%p2080_p8), %s1670_s13, 16  }
 0x8aa   : > { %2474 = vsyncadd (!%p2080_p8), %s1670_s13, 4294967280  ;;  %p34_p2 = scmp.ge.s32.totalorder %s2757_s29, 4   ;;  %s3084_s21 = smov %s2481_s22 }
 0x8ab   : > { %s3085_s22 = smov %s2485_s23  ;;  %s3086_s23 = smov %s2769_s7 }
 0x8ac   : > { %s3087_s24 = smov %s2757_s29  ;;  %36 = sbr.rel (!%p34_p2) target bundleno = 22 (0x16), region = 165 }
 0x8b3   :  { %1674 = vsyncpa [#allocation3], 1 }
 0x8b4   :  { %1676 = vsyncpa [#allocation3 + $0x1], 1 }
 0x8b5   :  { %1677 = vsyncpa [#allocation6], 1 }
 0x8b6   :  { %1679 = vsyncpa [#allocation6 + $0x1], 1 }
 0x8b7   :  { %1680 = vsyncpa [#allocation9], 1 }
 0x8b8   :  { %1681 = vsyncpa [#allocation12], 1 }
 0x8b9   :  { %1682 = vsyncpa [#allocation4], 1 }
 0x8ba   :  { %1684 = vsyncpa [#allocation4 + $0x1], 1 }

// kernel: tpu_custom_call.1
= control target key start
LH: loop header
LB: loop body
LE: loop exit
PB: predicated region body
PF: predicated region fallthrough
CT: control target
= control target key end

     0   :  { %s3012_s0 = inlined_call_operand.hbm [shape: f32[2,1,8,8], index: 0, kind: input, shape index: {}]   ;;  %s3013_s1 = inlined_call_operand.hbm [shape: bf16[2,1,8,16], index: 1, kind: input, shape index: {}]   ;;  %s3014_s2 = inlined_call_operand.vmem [shape: bf16[2,1,10], index: 2, kind: input, shape index: {}]   ;;  %s3015_s3 = inlined_call_operand.vmem [shape: bf16[16,128], index: 3, kind: input, shape index: {}]   ;;  %s3016_s4 = inlined_call_operand.vmem [shape: f32[1,128], index: 4, kind: input, shape index: {}]   ;;  %s3017_s5 = inlined_call_operand.hbm [shape: bf16[128,128], index: 5, kind: input, shape index: {}]   ;;  %s3018_s6 = inlined_call_operand.vmem [shape: f32[1,128], index: 6, kind: input, shape index: {}]   ;;  %s3019_s7 = inlined_call_operand.vmem [shape: f32[1,8], index: 7, kind: input, shape index: {}]   ;;  %s3020_s8 = inlined_call_operand.hbm [shape: bf16[128,256], index: 8, kind: input, shape index: {}]   ;;  %s3021_s9 = inlined_call_operand.vmem [shape: bf16[10,256], index: 9, kind: input, shape index: {}]   ;;  %s3022_s10 = inlined_call_operand.hbm [shape: bf16[256,128], index: 10, kind: input, shape index: {}]   ;;  %s3023_s11 = inlined_call_operand.vmem [shape: f32[1,128], index: 11, kind: input, shape index: {}]   ;;  %s3024_s12 = inlined_call_operand.hbm [shape: bf16[128,128], index: 12, kind: input, shape index: {}]   ;;  %s3025_s13 = inlined_call_operand.vmem [shape: f32[1,128], index: 13, kind: input, shape index: {}]   ;;  %s3026_s14 = inlined_call_operand.hbm [shape: bf16[128,128], index: 14, kind: input, shape index: {}]   ;;  %s3027_s15 = inlined_call_operand.vmem [shape: f32[1,128], index: 15, kind: input, shape index: {}]   ;;  %s3028_s16 = inlined_call_operand.hbm [shape: f32[2,1,128], index: 16, kind: output, shape index: {}]  }
   0x1   :  { %3039 = sst [smem:[#allocation21_spill]] %s3012_s0 }
   0x2   :  { %3040 = sst [smem:[#allocation22_spill]] %s3014_s2 }
   0x3   :  { %3041 = sst [smem:[#allocation23_spill]] %s3017_s5 }
   0x4   :  { %3042 = sst [smem:[#allocation24_spill]] %s3019_s7 }
   0x5   :  { %3043 = sst [smem:[#allocation25_spill]] %s3020_s8 }
   0x6   :  { %3044 = sst [smem:[#allocation26_spill]] %s3021_s9 }
   0x7   :  { %3045 = sst [smem:[#allocation27_spill]] %s3022_s10 }
   0x8   :  { %3046 = sst [smem:[#allocation28_spill]] %s3023_s11 }
   0x9   :  { %3047 = sst [smem:[#allocation29_spill]] %s3024_s12 }
   0xa   :  { %3048 = sst [smem:[#allocation30_spill]] %s3025_s13 }
   0xb   :  { %3049 = sst [smem:[#allocation31_spill]] %s3027_s15 }
   0xc   :  { %3050 = sst [smem:[#allocation32_spill]] %s3028_s16 }
   0xd   :  { %21 = vsyncpa [#allocation3], 0 }
   0xe   :  { %23 = vsyncpa [#allocation3 + $0x1], 0 }
   0xf   :  { %24 = vsyncpa [#allocation6], 0 }
  0x10   :  { %26 = vsyncpa [#allocation6 + $0x1], 0 }
  0x11   :  { %27 = vsyncpa [#allocation9], 0 }
  0x12   :  { %28 = vsyncpa [#allocation12], 0 }
  0x13   :  { %29 = vsyncpa [#allocation4], 0 }
  0x14   :  { %31 = vsyncpa [#allocation4 + $0x1], 0  ;;  %s2591_s21 = smov 0   ;;  %s2593_s22 = smov 0  }
  0x15   :  { %s2595_s23 = smov 0   ;;  %s2597_s24 = smov 0  }
  0x16 LB: > { %s2491_s25 = smov [#allocation7]   ;;  %s2612_s27 = sadd.s32 4294967295, %s2489_s24   ;;  %s2489_s24 = sphi %s2597_s24, %s3087_s24   ;;  %s2485_s23 = sphi %s2595_s23, %s3086_s23   ;;  %s2481_s22 = sphi %s2593_s22, %s3085_s22   ;;  %s2477_s21 = sphi %s2591_s21, %s3084_s21  }
  0x17   : > { %s437_s26 = sshll.u32 %s2491_s25, 4  ;;  %p1803_p0 = scmp.ge.s32.totalorder %s2489_s24, 1  ;;  %s2617_s26 = int_to_ptr.vmem [resolvable:$true] %s437_s26 }
  0x18   : > { %p3034_p1 = scmp.eq.s32.totalorder %s2612_s27, 0  ;;  %p419_p2 = scmp.lt.s32.totalorder %s2489_s24, 3 }
  0x19   : > { %s2492_s29 = smov [#allocation8]   ;;  %s2493_s17 = smov [#allocation11]  }
  0x1a   : > { %p2619_p3 = pnand %p1803_p0, %p419_p2  ;;  %s456_s30 = sshll.u32 %s2492_s29, 4  ;;  %s2632_s30 = int_to_ptr.vmem [resolvable:$true] %s456_s30 }
  0x1b   : > { %s2634_s18 = sshll.u32 %s2493_s17, 4  ;;  %s3053_s5 = sld [smem:[#allocation23_spill]]  ;;  %s489_s18 = int_to_ptr.vmem [resolvable:$true] %s2634_s18 }
  0x1c   : > { %s3051_s28 = scalar_select %p2619_p3, 1, 0 }
  0x1d   : > { %p2056_p5 = pneg %p2619_p3 }
  0x1f   : > { %p2628_p6 = pnand %p2056_p5, %p3034_p1 }
  0x21   : > { %s2207_s25 = scalar_lea.hbm %s3053_s5, 1024  ;;  %p2644_p8 = pneg %p2628_p6 }
  0x22   : > { %p2208_p7 = scmp.ne.s32.totalorder %s3053_s5, %s2207_s25  ;;  %p2214_p11 = scmp.lt.u32.totalorder %s2207_s25, %s3053_s5 }
  0x24   : > { %p2210_p9 = pnand %p2644_p8, %p2208_p7 }
  0x26   : > { %p2211_p10 = pneg %p2210_p9 }
  0x28   : > { %p2216_p12 = pnand %p2214_p11, %p2211_p10 }
  0x2a   : > { %2219 = shalt.err (!%p2216_p12)
}
  0x2b   : > { %s2220_s15 = scalar_lea.vmem %s2617_s26, 1024  ;;  %p2228_p5 = scmp.lt.s32.totalorder %s2617_s26, %s2617_s26 }
  0x2c   : > { %p2221_p13 = scmp.ne.s32.totalorder %s2617_s26, %s2220_s15  ;;  %p2229_p4 = scmp.lt.s32.totalorder %s2220_s15, %s2220_s15 }
  0x2e   : > { %p2223_p0 = pnand %p2221_p13, %p2644_p8  ;;  %p2230_p7 = por %p2229_p4, %p2228_p5 }
  0x30   : > { %p2224_p2 = pneg %p2223_p0 }
  0x32   : > { %p2231_p9 = pnand %p2230_p7, %p2224_p2 }
  0x34   : > { %2234 = shalt.err (!%p2231_p9)
}
  0x35   : > { %s3032_s16 = smov 64   ;;  %s2495_s13 = smov 4  }
  0x36   : > { %2059 = dma.hbm_to_vmem [thread:$0]  (!%p2628_p6), %s3053_s5, 1024, %s2617_s26, [#allocation6], %s3032_s16, %s3032_s16, %s2495_s13  }
  0x37   : > { %s3055_s8 = sld [smem:[#allocation25_spill]] }
  0x3d   : > { %s2235_s15 = scalar_lea.hbm %s3055_s8, 2048 }
  0x3e   : > { %p2236_p4 = scmp.ne.s32.totalorder %s3055_s8, %s2235_s15  ;;  %p2242_p12 = scmp.lt.u32.totalorder %s2235_s15, %s3055_s8 }
  0x40   : > { %p2238_p10 = pnand %p2236_p4, %p2644_p8 }
  0x42   : > { %p2239_p11 = pneg %p2238_p10 }
  0x44   : > { %p2244_p13 = pnand %p2242_p12, %p2239_p11 }
  0x46   : > { %2247 = shalt.err (!%p2244_p13)
}
  0x47   : > { %s2248_s26 = scalar_lea.vmem %s2632_s30, 2048  ;;  %p2256_p7 = scmp.lt.s32.totalorder %s2632_s30, %s2632_s30 }
  0x48   : > { %p2249_p0 = scmp.ne.s32.totalorder %s2632_s30, %s2248_s26  ;;  %p2257_p9 = scmp.lt.s32.totalorder %s2248_s26, %s2248_s26 }
  0x4a   : > { %p2251_p2 = pnand %p2249_p0, %p2644_p8  ;;  %p2258_p4 = por %p2257_p9, %p2256_p7 }
  0x4c   : > { %p2252_p5 = pneg %p2251_p2 }
  0x4e   : > { %p2259_p10 = pnand %p2258_p4, %p2252_p5 }
  0x50   : > { %2262 = shalt.err (!%p2259_p10)
}
  0x51   : > { %s2496_s2 = smov 128   ;;  %s2497_s7 = smov 8  }
  0x52   : > { %2062 = dma.hbm_to_vmem [thread:$0]  (!%p2628_p6), %s3055_s8, 2048, %s2632_s30, [#allocation9], %s2496_s2, %s2496_s2, %s2497_s7  }
  0x53   : > { %s3056_s12 = sld [smem:[#allocation29_spill]] }
  0x59   : > { %s2263_s25 = scalar_lea.hbm %s3056_s12, 1024 }
  0x5a   : > { %p2264_p11 = scmp.ne.s32.totalorder %s3056_s12, %s2263_s25  ;;  %p2270_p0 = scmp.lt.u32.totalorder %s2263_s25, %s3056_s12 }
  0x5c   : > { %p2266_p12 = pnand %p2264_p11, %p2644_p8 }
  0x5e   : > { %p2267_p13 = pneg %p2266_p12 }
  0x60   : > { %p2272_p2 = pnand %p2270_p0, %p2267_p13 }
  0x62   : > { %2275 = shalt.err (!%p2272_p2)
}
  0x63   : > { %s2276_s9 = scalar_lea.vmem %s489_s18, 1024  ;;  %p2284_p4 = scmp.lt.s32.totalorder %s489_s18, %s489_s18 }
  0x64   : > { %p2277_p5 = scmp.ne.s32.totalorder %s489_s18, %s2276_s9  ;;  %p2285_p10 = scmp.lt.s32.totalorder %s2276_s9, %s2276_s9 }
  0x66   : > { %p2279_p7 = pnand %p2277_p5, %p2644_p8  ;;  %p2286_p1 = por %p2285_p10, %p2284_p4 }
  0x68   : > { %p2280_p9 = pneg %p2279_p7 }
  0x6a   : > { %p2287_p3 = pnand %p2286_p1, %p2280_p9 }
  0x6c   : > { %2290 = shalt.err (!%p2287_p3)
}
  0x6d   : > { %s3057_s30 = smov 64   ;;  %s2498_s7 = smov [#allocation10]  }
  0x6e   : > { %2068 = dma.hbm_to_vmem [thread:$0]  (!%p2628_p6), %s3056_s12, 1024, %s489_s18, [#allocation12], %s3057_s30, %s3057_s30, %s2495_s13  }
  0x6f   : > { %s472_s11 = sshll.u32 %s2498_s7, 4  ;;  %s2499_s19 = smov [#allocation13]   ;;  %s473_s11 = int_to_ptr.vmem [resolvable:$true] %s472_s11 }
  0x70   : > { %s504_s20 = sshll.u32 %s2499_s19, 4  ;;  %s3058_s10 = sld [smem:[#allocation27_spill]]  ;;  %s505_s20 = int_to_ptr.vmem [resolvable:$true] %s504_s20 }
  0x76   : > { %s2291_s15 = scalar_lea.hbm %s3058_s10, 2048 }
  0x77   : > { %p2292_p1 = scmp.ne.s32.totalorder %s3058_s10, %s2291_s15  ;;  %p2298_p12 = scmp.lt.u32.totalorder %s2291_s15, %s3058_s10 }
  0x79   : > { %p2294_p3 = pnand %p2292_p1, %p2644_p8 }
  0x7b   : > { %p2295_p11 = pneg %p2294_p3 }
  0x7d   : > { %p2300_p13 = pnand %p2298_p12, %p2295_p11 }
  0x7f   : > { %2303 = shalt.err (!%p2300_p13)
}
  0x80   : > { %s2304_s18 = scalar_lea.vmem %s473_s11, 2048  ;;  %p2312_p7 = scmp.lt.s32.totalorder %s473_s11, %s473_s11 }
  0x81   : > { %p2305_p0 = scmp.ne.s32.totalorder %s473_s11, %s2304_s18  ;;  %p2313_p9 = scmp.lt.s32.totalorder %s2304_s18, %s2304_s18 }
  0x83   : > { %p2307_p2 = pnand %p2305_p0, %p2644_p8  ;;  %p2314_p4 = por %p2313_p9, %p2312_p7 }
  0x85   : > { %p2308_p5 = pneg %p2307_p2 }
  0x87   : > { %p2315_p10 = pnand %p2314_p4, %p2308_p5 }
  0x89   : > { %2318 = shalt.err (!%p2315_p10)
}
  0x8a   : > { %2065 = dma.hbm_to_vmem [thread:$0]  (!%p2628_p6), %s3058_s10, 2048, %s473_s11, [#allocation9], %s3057_s30, %s3057_s30, %s2495_s13  }
  0x8b   : > { %s2319_s25 = scalar_lea.hbm %s3026_s14, 1024 }
  0x8c   : > { %p2320_p1 = scmp.ne.s32.totalorder %s3026_s14, %s2319_s25  ;;  %p2326_p12 = scmp.lt.u32.totalorder %s2319_s25, %s3026_s14 }
  0x8e   : > { %p2322_p3 = pnand %p2320_p1, %p2644_p8 }
  0x90   : > { %p2323_p11 = pneg %p2322_p3 }
  0x92   : > { %p2328_p13 = pnand %p2326_p12, %p2323_p11 }
  0x94   : > { %2331 = shalt.err (!%p2328_p13)
}
  0x95   : > { %s2332_s16 = scalar_lea.vmem %s505_s20, 1024  ;;  %p2340_p7 = scmp.lt.s32.totalorder %s505_s20, %s505_s20 }
  0x96   : > { %p2333_p0 = scmp.ne.s32.totalorder %s505_s20, %s2332_s16  ;;  %p2341_p9 = scmp.lt.s32.totalorder %s2332_s16, %s2332_s16 }
  0x98   : > { %p2335_p2 = pnand %p2333_p0, %p2644_p8  ;;  %p2342_p4 = por %p2341_p9, %p2340_p7 }
  0x9a   : > { %p2336_p5 = pneg %p2335_p2 }
  0x9c   : > { %p2343_p10 = pnand %p2342_p4, %p2336_p5 }
  0x9e   : > { %2346 = shalt.err (!%p2343_p10)
}
  0x9f   : > { %2071 = dma.hbm_to_vmem [thread:$0]  (!%p2628_p6), %s3026_s14, 1024, %s505_s20, [#allocation12], %s3057_s30, %s3057_s30, %s2495_s13  }
  0xa0   : > { %s1802_s0 = sadd.s32 4294967294, %s2489_s24   ;;  %s2757_s29 = sadd.s32 1, %s2489_s24  }
  0xa1   : > { %s44_s5 = sadd.s32 1, %s2485_s23  ;;  %s41_s2 = ssub.s32 %s2489_s24, %s2757_s29 }
  0xa2   : > { %p51_p8 = scmp.ne.s32.totalorder %s2485_s23, %s2481_s22  ;;  %p42_p1 = scmp.eq.s32.totalorder %s41_s2, 0 }
  0xa3   : > { %p52_p3 = scmp.eq.s32.totalorder %s2489_s24, 0  ;;  %p57_p11 = scmp.ne.s32.totalorder %s2481_s22, %s2477_s21 }
  0xa4   : > { %p406_p12 = scmp.eq.s32.totalorder %s2612_s27, 1  ;;  %p3059_p0 = scmp.eq.s32.totalorder %s2612_s27, 0 }
  0xa5   : > { %s2769_s7 = scalar_select %p42_p1, %s2485_s23, %s44_s5  }
  0xa6   : > { %p53_p13 = por %p52_p3, %p51_p8  ;;  %p2773_p2 = por %p3059_p0, %p57_p11 }
  0xa7   : > { %p2777_p6 = por %p406_p12, %p51_p8  ;;  %p412_p5 = scmp.eq.s32.totalorder %s1802_s0, 1 }
  0xa8   : > { %s3060_s13 = scalar_select %p2773_p2, 1, 0 }
  0xa9   : > { %s3061_s30 = scalar_select %p2777_p6, 1, 0 }
  0xaa   : > { %p2088_p7 = scmp.lt.s32.totalorder %s2489_s24, 2  ;;  %s2783_s20 = sand.u32 1, %s2485_s23  }
  0xab   : > { %p2785_p9 = por %p412_p5, %p57_p11  ;;  %s1810_s25 = sshll.u32 %s2783_s20, 3 }
  0xac   : > { %s1811_s17 = sshll.u32 %s2489_s24, 7  ;;  %s3063_s9 = sld [smem:[#allocation21_spill]] }
  0xad   : > { %s3062_s19 = scalar_select %p2785_p9, 1, 0 }
  0xae   : > { %s525_s11 = scalar_lea.vmem [#allocation2], %s1810_s25  ;;  %p2796_p4 = pnand %p2088_p7, %p53_p13 }
  0xaf   : > { %s532_s18 = sshll.u32 %s525_s11, 4  ;;  %s522_s2 = scalar_lea.sflag [#allocation3], %s2783_s20  ;;  %s2800_s18 = int_to_ptr.vmem [resolvable:$true] %s532_s18 }
  0xb0   : > { %p2349_p8 = pneg %p2796_p4 }
  0xb2   : > { %s2794_s16 = scalar_lea.hbm %s3063_s9, %s1811_s17  ;;  %s2352_s15 = scalar_lea.hbm %s3063_s9, 256 }
  0xb3   : > { %s2347_s8 = scalar_lea.hbm %s2794_s16, 128  ;;  %p2353_p11 = scmp.lt.u32.totalorder %s2794_s16, %s3063_s9 }
  0xb4   : > { %p2348_p10 = scmp.ne.s32.totalorder %s2794_s16, %s2347_s8  ;;  %p2354_p12 = scmp.lt.u32.totalorder %s2352_s15, %s2347_s8 }
  0xb5   : > { %p2356_p0 = scmp.lt.u32.totalorder %s2347_s8, %s2794_s16 }
  0xb6   : > { %p2350_p1 = pnand %p2349_p8, %p2348_p10  ;;  %p2355_p13 = por %p2354_p12, %p2353_p11 }
  0xb8   : > { %p2351_p3 = pneg %p2350_p1  ;;  %p2357_p5 = por %p2356_p0, %p2355_p13 }
  0xba   : > { %p2358_p7 = pnand %p2357_p5, %p2351_p3 }
  0xbc   : > { %2361 = shalt.err (!%p2358_p7)
}
  0xbd   : > { %s2362_s5 = scalar_lea.vmem %s2800_s18, 128  ;;  %s2500_s25 = smov [#allocation2]  }
  0xbe   : > { %p2363_p10 = scmp.ne.s32.totalorder %s2800_s18, %s2362_s5  ;;  %s2367_s17 = sshll.u32 %s2500_s25, 4  ;;  %s2368_s17 = int_to_ptr.vmem [resolvable:$false] %s2367_s17 }
  0xbf   : > { %s2369_s26 = scalar_lea.vmem %s2368_s17, 256  ;;  %p2370_p6 = scmp.lt.s32.totalorder %s2800_s18, %s2368_s17 }
  0xc0   : > { %p2365_p1 = pnand %p2363_p10, %p2349_p8  ;;  %p2371_p11 = scmp.lt.s32.totalorder %s2369_s26, %s2362_s5 }
  0xc2   : > { %p2366_p9 = pneg %p2365_p1  ;;  %p2372_p12 = por %p2371_p11, %p2370_p6 }
  0xc4   : > { %p2373_p13 = pnand %p2372_p12, %p2366_p9 }
  0xc6   : > { %2376 = shalt.err (!%p2373_p13)
}
  0xc7   : > { %2075 = dma.hbm_to_vmem [thread:$0]  (!%p2796_p4), %s2794_s16, 128, %s2800_s18, %s522_s2  }
  0xc8   : > { %s1812_s8 = sshll.u32 %s2783_s20, 2  ;;  %s1813_s15 = sshll.u32 %s2489_s24, 6 }
  0xc9   : > { %s2834_s9 = scalar_lea.hbm %s3013_s1, %s1813_s15  ;;  %s543_s5 = scalar_lea.vmem [#allocation5], %s1812_s8 }
  0xca   : > { %s550_s17 = sshll.u32 %s543_s5, 4  ;;  %s3065_s26 = sand.u32 1, %s2489_s24   ;;  %s551_s17 = int_to_ptr.vmem [resolvable:$true] %s550_s17 }
  0xcb   : > { %s540_s10 = scalar_lea.sflag [#allocation6], %s3065_s26  ;;  %s2377_s12 = scalar_lea.hbm %s2834_s9, 64 }
  0xcc   : > { %p2378_p6 = scmp.ne.s32.totalorder %s2834_s9, %s2377_s12  ;;  %s2382_s18 = scalar_lea.hbm %s3013_s1, 128 }
  0xcd   : > { %p2383_p0 = scmp.lt.u32.totalorder %s2834_s9, %s3013_s1  ;;  %p2384_p5 = scmp.lt.u32.totalorder %s2382_s18, %s2377_s12 }
  0xce   : > { %p2380_p9 = pnand %p2378_p6, %p2349_p8  ;;  %p2386_p10 = scmp.lt.u32.totalorder %s2377_s12, %s2834_s9 }
  0xcf   : > { %p2385_p7 = por %p2384_p5, %p2383_p0 }
  0xd0   : > { %p2381_p3 = pneg %p2380_p9 }
  0xd1   : > { %p2387_p1 = por %p2386_p10, %p2385_p7 }
  0xd3   : > { %p2388_p11 = pnand %p2387_p1, %p2381_p3 }
  0xd5   : > { %2391 = shalt.err (!%p2388_p11)
}
  0xd6   : > { %s2392_s8 = scalar_lea.vmem %s551_s17, 64  ;;  %s2501_s11 = smov [#allocation5]  }
  0xd7   : > { %p2393_p12 = scmp.ne.s32.totalorder %s551_s17, %s2392_s8  ;;  %s2397_s25 = sshll.u32 %s2501_s11, 4  ;;  %s2398_s25 = int_to_ptr.vmem [resolvable:$false] %s2397_s25 }
  0xd8   : > { %s2399_s5 = scalar_lea.vmem %s2398_s25, 128  ;;  %p2400_p9 = scmp.lt.s32.totalorder %s551_s17, %s2398_s25 }
  0xd9   : > { %p2395_p13 = pnand %p2393_p12, %p2349_p8  ;;  %p2401_p2 = scmp.lt.s32.totalorder %s2399_s5, %s2392_s8 }
  0xdb   : > { %p2396_p6 = pneg %p2395_p13  ;;  %p2402_p0 = por %p2401_p2, %p2400_p9 }
  0xdd   : > { %p2403_p5 = pnand %p2402_p0, %p2396_p6 }
  0xdf   : > { %2406 = shalt.err (!%p2403_p5)
}
  0xe0   : > { %2078 = dma.hbm_to_vmem [thread:$0]  (!%p2796_p4), %s2834_s9, 64, %s551_s17, %s540_s10  }
  0xe1   : > { %p3066_p3 = scmp.ne.s32.totalorder %s3051_s28, 0 }
  0xe2   : > { %s2860_s12 = sand.u32 (!%p3066_p3), 1, %s2481_s22   ;;  %p3067_p8 = scmp.ne.s32.totalorder (!%p3066_p3), %s3060_s13, 0 }
  0xe3   : > { %565 = sbr.rel (%p3066_p3) target bundleno = 2212 (0x8a4), region = 84  ;;  %s1815_s26 = sshll.u32 (!%p3066_p3), %s2860_s12, 3 }
  0xe4   : > { %s568_s20 = scalar_lea.sflag (!%p3066_p3), [#allocation3], %s2860_s12  ;;  %s571_s16 = scalar_lea.vmem (!%p3066_p3), [#allocation2], %s1815_s26 }
  0xea   : > { %2452 = dma.done.wait (%p3067_p8), %s568_s20, 128  }
  0xeb   : > { %2454 = vsyncadd (%p3067_p8), %s568_s20, 4294967168  ;;  %s576_s10 = sand.u32 1, %s2612_s27   ;;  %s1816_s28 = sshll.u32 %s2860_s12, 2 }
  0xec   : > { %s577_s9 = scalar_lea.sflag [#allocation6], %s576_s10  ;;  %s580_s0 = scalar_lea.vmem [#allocation5], %s1816_s28 }
  0xed   : > { %2456 = dma.done.wait (%p3067_p8), %s577_s9, 64  }
  0xee   : > { %2458 = vsyncadd (%p3067_p8), %s577_s9, 4294967232  ;;  %p3068_p2 = scmp.eq.s32.totalorder %s2612_s27, 0 }
  0xf0   : > { %2460 = dma.done.wait (%p3068_p2), [#allocation6], 1024   ;;  %p3069_p4 = pmov %p3068_p2 }
  0xf1   : > { %p3070_p7 = pmov %p3068_p2 }
  0xf2   : > { %2462 = vsyncadd (%p3069_p4), [#allocation6], 4294966272 }
  0xf3   : > { %2464 = dma.done.wait (%p3070_p7), [#allocation9], 4096   ;;  %p3071_p10 = pmov %p3068_p2 }
  0xf4   : > { %p3072_p1 = pmov %p3068_p2 }
  0xf5   : > { %2466 = vsyncadd (%p3071_p10), [#allocation9], 4294963200 }
  0xf6   : > { %2468 = dma.done.wait (%p3072_p1), [#allocation12], 2048   ;;  %p3073_p11 = pmov %p3072_p1 }
  0xf7   : > { %v2502_v0 = vmov 0.0   ;;  %vm2503_vm0 = vmmov 0   ;;  %v661_v1 = vld [vmem:[%s580_s0] sm:$0xf]  ;;  %v660_v2 = vld [vmem:[%s571_s16] sm:$0xff]  ;;  %vm664_vm1 = vcmask 64512  }
  0xf8   : > { %2470 = vsyncadd (%p3073_p11), [#allocation12], 4294965248  ;;  %1949 = vmatprep.subr.mxu1 %v2502_v0  ;;  %1951 = vmatprep.mubr.msk.f32.mxu1 %vm2503_vm0, %v2502_v0  ;;  %v662_v3 = vunpack.c.l.bf16 %v661_v1  ;;  %v2139_v4 = vld [vmem:[%s3015_s3] sm:$0xff]   ;;  %vm754_vm2 = vcmask 130048   ;;  %v2140_v15 = vld [vmem:[#allocation7] sm:$0xff]   ;;  %s3074_s5 = sld [smem:[#allocation26_spill]] }
  0xf9   : > { %v1823_v8 = vld [vmem:[%s3016_s4] ss:$0 sm:$0xff]  ;;  %v2142_v17 = vld [vmem:[#allocation7 + $0x10] sm:$0xff]   ;;  %v2143_v18 = vld [vmem:[#allocation7 + $0x18] sm:$0xff]   ;;  %s3075_s16 = sld [smem:[#allocation24_spill]]  ;;  %vm1208_vm3 = vcmask 1044480  }
  0xfa   : > { %1950 = vmatpush3.msra.mxu1 %v662_v3  ;;  %v2141_v16 = vld [vmem:[#allocation7 + $0x8] sm:$0xff]   ;;  %v2144_v19 = vld [vmem:[#allocation7 + $0x20] sm:$0xff]   ;;  %v2146_v21 = vld [vmem:[#allocation7 + $0x30] sm:$0xff]   ;;  %p656_p12 = scmp.lt.s32.totalorder %s2612_s27, 1  ;;  %s3076_s17 = sld [smem:[#allocation22_spill]]  ;;  %v2504_v53 = vmov 0  }
  0xfb   : > { %1952 = vmatmul.mubr.msk.f32.vlgmr.msra.gmra.mrb[0].mxu1 %vm664_vm1, %v660_v2  ;;  %1954 = vmatprep.subr.bf16.mxu1 %v2502_v0  ;;  %v2145_v20 = vld [vmem:[#allocation7 + $0x28] sm:$0xff]   ;;  %v2147_v22 = vld [vmem:[#allocation7 + $0x38] sm:$0xff]   ;;  %vm1204_vm4 = vcmask 80896   ;;  %v2175_v55 = vld [vmem:[#allocation10 + $0x40] sm:$0xff]   ;;  %s3077_s8 = sld [smem:[#allocation28_spill]]  ;;  %s3078_s26 = sld [smem:[#allocation30_spill]] }
  0xfc   : > { %1956 = vmatprep.mubr.msk.bf16.mxu1 %vm2503_vm0, %v2502_v0  ;;  %1955 = vmatpush3.bf16.msra.mxu1 %v2139_v4  ;;  %v2148_v26 = vld [vmem:[#allocation8 + $0x4] ss:$8 sps:$4 sm:$0xff]   ;;  %v2150_v27 = vld [vmem:[#allocation8] ss:$8 sps:$4 sm:$0xff]   ;;  %v2151_v28 = vld [vmem:[#allocation8 + $0x14] ss:$8 sps:$4 sm:$0xff]  }
  0xfd   : > { %1960 = vmatprep.subr.mxu1 %v2502_v0  ;;  %1153 = vmatprep.subr.bf16.mxu0 %v2148_v26  ;;  %v2153_v29 = vld [vmem:[#allocation8 + $0x10] ss:$8 sps:$4 sm:$0xff]   ;;  %v2154_v30 = vld [vmem:[#allocation8 + $0x24] ss:$8 sps:$4 sm:$0xff]   ;;  %v2156_v31 = vld [vmem:[#allocation8 + $0x20] ss:$8 sps:$4 sm:$0xff]  }
  0xfe   : > { %1154 = vmatpush1.bf16.msra.mxu0 %v2150_v27  ;;  %v2157_v32 = vld [vmem:[#allocation8 + $0x34] ss:$8 sps:$4 sm:$0xff]   ;;  %v2159_v33 = vld [vmem:[#allocation8 + $0x30] ss:$8 sps:$4 sm:$0xff]   ;;  %v2160_v34 = vld [vmem:[#allocation8 + $0x44] ss:$8 sps:$4 sm:$0xff]   ;;  %1185 = vmatprep.mubr.bf16.mxu0 %v2504_v53 }
  0xff   : > { %1155 = vmatprep.subr.bf16.mxu0 %v2151_v28  ;;  %v2162_v35 = vld [vmem:[#allocation8 + $0x40] ss:$8 sps:$4 sm:$0xff]   ;;  %v2163_v36 = vld [vmem:[#allocation8 + $0x54] ss:$8 sps:$4 sm:$0xff]   ;;  %v2165_v37 = vld [vmem:[#allocation8 + $0x50] ss:$8 sps:$4 sm:$0xff]  }
 0x100   : > { %v2166_v38 = vld [vmem:[#allocation8 + $0x64] ss:$8 sps:$4 sm:$0xff]   ;;  %v2168_v39 = vld [vmem:[#allocation8 + $0x60] ss:$8 sps:$4 sm:$0xff]   ;;  %v2169_v40 = vld [vmem:[#allocation8 + $0x74] ss:$8 sps:$4 sm:$0xff]  }
 0x101   : > { %v1827_v41 = vld [vmem:[%s3018_s6] ss:$0 sm:$0xff]  ;;  %v2171_v46 = vld [vmem:[%s3074_s5 + $0x4] ss:$8 sps:$4 sm:$0x1f]   ;;  %s657_s9 = scalar_select %p656_p12, %s2612_s27, 1 }
 0x102   : > { %1156 = vmatpush1.bf16.msra.mxu0 %v2153_v29  ;;  %v982_v49 = vld [vmem:[%s3075_s16] sm:$0x1]  ;;  %v2173_v52 = vld [vmem:[#allocation8 + $0x70] ss:$8 sps:$4 sm:$0xff]   ;;  %v2176_v57 = vld [vmem:[#allocation10] sm:$0xff]   ;;  %s3079_s10 = sld [smem:[#allocation31_spill]] }
 0x103   : > { %1157 = vmatprep.subr.bf16.mxu0 %v2154_v30  ;;  %v2174_v50 = vld [vmem:[%s3074_s5] ss:$8 sps:$4 sm:$0x1f]   ;;  %s658_s18 = scalar_lea.vmem %s3076_s17, %s657_s9  ;;  %v2181_v1 = vld [vmem:[#allocation10 + $0x58] sm:$0xff]   ;;  %v2183_v3 = vld [vmem:[#allocation10 + $0x60] sm:$0xff]   ;;  %s1889_s28 = sshll.u32 %s2612_s27, 4 }
 0x104   : > { %v1210_v51 = vsel %vm1208_vm3, %v2174_v50, 0  ;;  %v663_v54 = vld [vmem:[%s658_s18] sm:$0x1]  ;;  %v2179_v62 = vld [vmem:[#allocation10 + $0x50] sm:$0xff]   ;;  %v2184_v4 = vld [vmem:[#allocation10 + $0x20] sm:$0xff]   ;;  %s655_s9 = scalar_lea.vmem [#allocation14], %s2860_s12 }
 0x105   : > { %v2177_v60 = vld [vmem:[#allocation10 + $0x48] sm:$0xff]   ;;  %v2180_v63 = vld [vmem:[#allocation10 + $0x10] sm:$0xff]   ;;  %v2198_v30 = vld [vmem:[#allocation11 + $0x38] sm:$0xff]   ;;  %s1657_s0 = sshll.u32 %s655_s9, 4  ;;  %s3080_s18 = sld [smem:[#allocation32_spill]]  ;;  %s2970_s0 = int_to_ptr.vmem [resolvable:$true] %s1657_s0 }
 0x106   : > { %1158 = vmatpush1.bf16.msra.mxu0 %v2156_v31  ;;  %v2178_v61 = vld [vmem:[#allocation10 + $0x8] sm:$0xff]   ;;  %v2197_v29 = vld [vmem:[#allocation11 + $0x30] sm:$0xff]   ;;  %v2199_v31 = vld [vmem:[#allocation13] sm:$0xff]   ;;  %s1645_s15 = scalar_lea.sflag [#allocation4], %s2860_s12  ;;  %s2407_s27 = scalar_lea.vmem %s2970_s0, 16 }
 0x107   : > { %1159 = vmatprep.subr.bf16.mxu0 %v2157_v32  ;;  %v2200_v32 = vld [vmem:[#allocation13 + $0x8] sm:$0xff]   ;;  %p2408_p13 = scmp.ne.s32.totalorder %s2970_s0, %s2407_s27  ;;  %p3081_p6 = scmp.ne.s32.totalorder %s3061_s30, 0 }
 0x109   : > { %p2409_p9 = pnand %p2408_p13, %p3081_p6 }
 0x10a   : > { %1160 = vmatpush1.bf16.msra.mxu0 %v2159_v33  ;;  %v2201_v33 = vld [vmem:[#allocation13 + $0x10] sm:$0xff]  }
 0x10b   : > { %1161 = vmatprep.subr.bf16.mxu0 %v2160_v34  ;;  %v2202_v34 = vld [vmem:[#allocation13 + $0x18] sm:$0xff]   ;;  %s2968_s2 = scalar_lea.hbm %s3080_s18, %s1889_s28  ;;  %p2410_p0 = pneg %p2409_p9 }
 0x10e   : > { %1162 = vmatpush1.bf16.msra.mxu0 %v2162_v35  ;;  %v2203_v35 = vld [vmem:[#allocation13 + $0x20] sm:$0xff]  }
 0x10f   : > { %1163 = vmatprep.subr.bf16.mxu0 %v2163_v36  ;;  %v2204_v36 = vld [vmem:[#allocation13 + $0x28] sm:$0xff]  }
 0x112   : > { %1164 = vmatpush1.bf16.msra.mxu0 %v2165_v37 }
 0x113   : > { %1165 = vmatprep.subr.bf16.mxu0 %v2166_v38  ;;  %v1292_v38 = vld [vmem:[%s3077_s8] sm:$0x1]  ;;  %s2505_s8 = smov [#allocation14]  }
 0x114   : > { %s2411_s11 = sshll.u32 %s2505_s8, 4  ;;  %s2412_s11 = int_to_ptr.vmem [resolvable:$false] %s2411_s11 }
 0x115   : > { %s2413_s25 = scalar_lea.vmem %s2412_s11, 32  ;;  %p2414_p5 = scmp.lt.s32.totalorder %s2970_s0, %s2412_s11 }
 0x116   : > { %1166 = vmatpush1.bf16.msra.mxu0 %v2168_v39  ;;  %p2415_p3 = scmp.lt.s32.totalorder %s2413_s25, %s2407_s27 }
 0x117   : > { %1167 = vmatprep.subr.bf16.mxu0 %v2169_v40 }
 0x118   : > { %p2416_p8 = por %p2415_p3, %p2414_p5 }
 0x11a   : > { %1168 = vmatpush1.bf16.msra.mxu0 %v2173_v52  ;;  %p2417_p2 = pnand %p2416_p8, %p2410_p0 }
 0x11b   : > { %1909 = vmatprep.subr.bf16.mxu0 %v2175_v55 }
 0x1ce   : > { %v734_v5 = vpop.f32.mrb[0].mxu1 }
 0x1cf   : > { %v738_v6 = vpack.c.bf16 %v734_v5, %v734_v5  ;;  %v1953_v7 = vpop.f32.mrb[1].mxu1  ;;  %v2185_v5 = vld [vmem:[#allocation10 + $0x68] sm:$0xff]  }
 0x1d0   : > { %v2187_v7 = vld [vmem:[#allocation10 + $0x70] sm:$0xff]  }
 0x1d1   : > { %1957 = vmatmul.mubr.msk.bf16.vlgmr.msra.gmra.mrb[4].mxu1 %vm754_vm2, %v738_v6  ;;  %v2186_v6 = vld [vmem:[#allocation10 + $0x28] sm:$0xff]  }
 0x1d2   : > { %1962 = vmatprep.mubr.msk.f32.mxu1 %vm2503_vm0, %v2502_v0 }
 0x2a4   : > { %v792_v9 = vpop.f32.mrb[4].mxu1 }
 0x2a5   : > { %v793_v10 = vadd.f32 %v1823_v8, %v792_v9  ;;  %v1958_v11 = vpop.f32.mrb[5].mxu1  ;;  %v2188_v9 = vld [vmem:[#allocation10 + $0x30] sm:$0xff]  }
 0x2a6   : > { %v795_v12 = vpop.f32.mrb[6].mxu1 }
 0x2a7   : > { %v798_v13 = vmax.f32 %v793_v10, 0.0  ;;  %v1959_v14 = vpop.f32.mrb[7].mxu1 }
 0x2a8   : > { %v2190_v14 = vld [vmem:[#allocation10 + $0x38] sm:$0xff]  }
 0x2a9   : > { %1961 = vmatpush3.msra.mxu1 %v798_v13  ;;  %v2189_v13 = vld [vmem:[#allocation10 + $0x78] sm:$0xff]  }
 0x2aa   : > { %1963 = vmatmul.mubr.msk.f32.vlgmr.msra.gmra.mrb[2].mxu1 %vm664_vm1, %v660_v2  ;;  %1965 = vmatprep.subr.bf16.mxu1 %v2502_v0  ;;  %v2182_v2 = vld [vmem:[#allocation10 + $0x18] sm:$0xff]  }
 0x2ab   : > { %1966 = vmatpush3.bf16.msra.mxu1 %v2140_v15  ;;  %1981 = vmatprep.mubr.msk.bf16.mxu1 %vm2503_vm0, %v2502_v0  ;;  %v2191_v15 = vld [vmem:[#allocation11] sm:$0xff]  }
 0x2ac   : > { %1967 = vmatprep.subr.bf16.mxu1 %v2502_v0 }
 0x2af   : > { %1968 = vmatpush3.bf16.msra.mxu1 %v2141_v16  ;;  %v2192_v16 = vld [vmem:[#allocation11 + $0x8] sm:$0xff]  }
 0x2b0   : > { %1969 = vmatprep.subr.bf16.mxu1 %v2502_v0 }
 0x2b3   : > { %1970 = vmatpush3.bf16.msra.mxu1 %v2142_v17  ;;  %v2193_v17 = vld [vmem:[#allocation11 + $0x10] sm:$0xff]  }
 0x2b4   : > { %1971 = vmatprep.subr.bf16.mxu1 %v2502_v0 }
 0x2b7   : > { %1972 = vmatpush3.bf16.msra.mxu1 %v2143_v18  ;;  %v2194_v18 = vld [vmem:[#allocation11 + $0x18] sm:$0xff]  }
 0x2b8   : > { %1973 = vmatprep.subr.bf16.mxu1 %v2502_v0 }
 0x2bb   : > { %1974 = vmatpush3.bf16.msra.mxu1 %v2144_v19  ;;  %v2195_v19 = vld [vmem:[#allocation11 + $0x20] sm:$0xff]  }
 0x2bc   : > { %1975 = vmatprep.subr.bf16.mxu1 %v2502_v0 }
 0x2bf   : > { %1976 = vmatpush3.bf16.msra.mxu1 %v2145_v20  ;;  %v2196_v20 = vld [vmem:[#allocation11 + $0x28] sm:$0xff]  }
 0x2c0   : > { %1977 = vmatprep.subr.bf16.mxu1 %v2502_v0 }
 0x2c3   : > { %1978 = vmatpush3.bf16.msra.mxu1 %v2146_v21 }
 0x2c4   : > { %1979 = vmatprep.subr.bf16.mxu1 %v2502_v0 }
 0x2c7   : > { %1980 = vmatpush3.bf16.msra.mxu1 %v2147_v22 }
 0x2c8   : > { %1985 = vmatprep.subr.mxu1 %v2502_v0 }
 0x37d   : > { %v865_v23 = vpop.f32.mrb[2].mxu1 }
 0x37e   : > { %v869_v24 = vpack.c.bf16 %v865_v23, %v865_v23  ;;  %v1964_v25 = vpop.f32.mrb[3].mxu1 }
 0x380   : > { %1982 = vmatmul.mubr.bf16.vlgmr.msra.gmra.mrb[8].mxu1 %v869_v24 }
 0x381   : > { %1987 = vmatprep.mubr.msk.f32.mxu1 %vm2503_vm0, %v2502_v0 }
 0x453   : > { %v975_v42 = vpop.f32.mrb[8].mxu1 }
 0x454   : > { %v976_v43 = vadd.f32 %v1827_v41, %v975_v42  ;;  %v1983_v44 = vpop.f32.mrb[9].mxu1 }
 0x455   : > { %v978_v45 = vpop.f32.mrb[10].mxu1 }
 0x456   : > { %v981_v47 = vmax.f32 %v976_v43, 0.0  ;;  %v1984_v48 = vpop.f32.mrb[11].mxu1 }
 0x457   : > { %v1447_v48 = vld [vmem:[%s3078_s26] sm:$0x1] }
 0x458   : > { %1986 = vmatpush3.msra.mxu1 %v981_v47  ;;  %v2206_v47 = vld [vmem:[#allocation13 + $0x38] sm:$0xff]  }
 0x459   : > { %1988 = vmatmul.mubr.msk.f32.vlgmr.msra.gmra.mrb[12].mxu1 %vm664_vm1, %v982_v49  ;;  %1855 = vmatprep.subr.msk.bf16.mxu1 %vm1208_vm3, %v2171_v46  ;;  %v2205_v46 = vld [vmem:[#allocation13 + $0x30] sm:$0xff]  }
 0x45a   : > { %1216 = vmatpush1.bf16.msra.mxu1 %v1210_v51  ;;  %1247 = vmatprep.mubr.bf16.mxu1 %v2504_v53 }
 0x45b   : > { %1990 = vmatprep.subr.bf16.mxu1 %v2502_v0 }
 0x45d   : > { %1856 = vmatmul.mubr.msk.bf16.vlgmr.msra.gmra.mrb[16].mxu1 %vm1204_vm4, %v663_v54 }
 0x45e   : > { %2006 = vmatprep.mubr.msk.bf16.mxu1 %vm2503_vm0, %v2502_v0  ;;  %1991 = vmatpush3.bf16.msra.mxu1 %v2191_v15 }
 0x45f   : > { %1992 = vmatprep.subr.bf16.mxu1 %v2502_v0 }
 0x462   : > { %1993 = vmatpush3.bf16.msra.mxu1 %v2192_v16 }
 0x463   : > { %1994 = vmatprep.subr.bf16.mxu1 %v2502_v0 }
 0x466   : > { %1995 = vmatpush3.bf16.msra.mxu1 %v2193_v17 }
 0x467   : > { %1996 = vmatprep.subr.bf16.mxu1 %v2502_v0 }
 0x46a   : > { %1997 = vmatpush3.bf16.msra.mxu1 %v2194_v18 }
 0x46b   : > { %1998 = vmatprep.subr.bf16.mxu1 %v2502_v0 }
 0x46e   : > { %1999 = vmatpush3.bf16.msra.mxu1 %v2195_v19 }
 0x46f   : > { %2000 = vmatprep.subr.bf16.mxu1 %v2502_v0 }
 0x472   : > { %2001 = vmatpush3.bf16.msra.mxu1 %v2196_v20 }
 0x473   : > { %2002 = vmatprep.subr.bf16.mxu1 %v2502_v0 }
 0x476   : > { %2003 = vmatpush3.bf16.msra.mxu1 %v2197_v29 }
 0x477   : > { %2004 = vmatprep.subr.bf16.mxu1 %v2502_v0 }
 0x47a   : > { %2005 = vmatpush3.bf16.msra.mxu1 %v2198_v30 }
 0x52c   : > { %v1052_v56 = vpop.f32.mrb[12].mxu1 }
 0x52d   : > { %v1056_v58 = vpack.c.bf16 %v1052_v56, %v1052_v56  ;;  %v1989_v59 = vpop.f32.mrb[13].mxu1 }
 0x52f   : > { %1186 = vmatmul.mubr.bf16.vlgmr.msra.gmra.mrb[0].mxu0 %v1056_v58 }
 0x530   : > { %1910 = vmatpush3.bf16.msra.mxu0 %v2176_v57  ;;  %v1249_v8 = vpop.f32.mrb[16].mxu1 }
 0x531   : > { %1911 = vmatprep.subr.bf16.mxu0 %v2177_v60  ;;  %v1251_v10 = vpop.f32.mrb[17].mxu1 }
 0x532   : > { %v1253_v11 = vpop.f32.mrb[18].mxu1 }
 0x533   : > { %v1254_v12 = vpop.f32.mrb[19].mxu1 }
 0x534   : > { %1912 = vmatpush3.bf16.msra.mxu0 %v2178_v61 }
 0x535   : > { %1913 = vmatprep.subr.bf16.mxu0 %v2179_v62 }
 0x538   : > { %1914 = vmatpush3.bf16.msra.mxu0 %v2180_v63 }
 0x539   : > { %1915 = vmatprep.subr.bf16.mxu0 %v2181_v1 }
 0x53c   : > { %1916 = vmatpush3.bf16.msra.mxu0 %v2182_v2 }
 0x53d   : > { %1917 = vmatprep.subr.bf16.mxu0 %v2183_v3 }
 0x540   : > { %1918 = vmatpush3.bf16.msra.mxu0 %v2184_v4 }
 0x541   : > { %1919 = vmatprep.subr.bf16.mxu0 %v2185_v5 }
 0x544   : > { %1920 = vmatpush3.bf16.msra.mxu0 %v2186_v6 }
 0x545   : > { %1921 = vmatprep.subr.bf16.mxu0 %v2187_v7 }
 0x548   : > { %1922 = vmatpush3.bf16.msra.mxu0 %v2188_v9 }
 0x549   : > { %1923 = vmatprep.subr.bf16.mxu0 %v2189_v13 }
 0x54c   : > { %1924 = vmatpush3.bf16.msra.mxu0 %v2190_v14 }
 0x54d   : > { %2010 = vmatprep.subr.bf16.mxu0 %v2502_v0 }
 0x602   : > { %v1187_v21 = vpop.f32.mrb[0].mxu0 }
 0x603   : > { %v1256_v22 = vmul.f32 %v1249_v8, %v1187_v21  ;;  %v1189_v23 = vpop.f32.mrb[1].mxu0 }
 0x604   : > { %v1257_v24 = vmul.f32 %v1251_v10, %v1189_v23  ;;  %v1191_v25 = vpop.f32.mrb[2].mxu0 }
 0x605   : > { %v1192_v26 = vpop.f32.mrb[3].mxu0  ;;  %v1258_v28 = vpack.c.bf16 %v1256_v22, %v1256_v22 }
 0x606   : > { %v1259_v27 = vpack.c.bf16 %v1257_v24, %v1257_v24 }
 0x608   : > { %1421 = vmatprep.mubr.bf16.mxu0 %v1259_v27 }
 0x609   : > { %1422 = vmatmul.mubr.bf16.vlgmr.msra.gmra.mrb[4].mxu0 %v1258_v28 }
 0x60a   : > { %2026 = vmatprep.mubr.msk.bf16.mxu0 %vm2503_vm0, %v2502_v0  ;;  %2011 = vmatpush3.bf16.msra.mxu0 %v2199_v31 }
 0x60b   : > { %2012 = vmatprep.subr.bf16.mxu0 %v2502_v0 }
 0x60e   : > { %2013 = vmatpush3.bf16.msra.mxu0 %v2200_v32 }
 0x60f   : > { %2014 = vmatprep.subr.bf16.mxu0 %v2502_v0 }
 0x612   : > { %2015 = vmatpush3.bf16.msra.mxu0 %v2201_v33 }
 0x613   : > { %2016 = vmatprep.subr.bf16.mxu0 %v2502_v0 }
 0x616   : > { %2017 = vmatpush3.bf16.msra.mxu0 %v2202_v34 }
 0x617   : > { %2018 = vmatprep.subr.bf16.mxu0 %v2502_v0 }
 0x61a   : > { %2019 = vmatpush3.bf16.msra.mxu0 %v2203_v35 }
 0x61b   : > { %2020 = vmatprep.subr.bf16.mxu0 %v2502_v0 }
 0x61e   : > { %2021 = vmatpush3.bf16.msra.mxu0 %v2204_v36 }
 0x61f   : > { %2022 = vmatprep.subr.bf16.mxu0 %v2502_v0 }
 0x622   : > { %2023 = vmatpush3.bf16.msra.mxu0 %v2205_v46 }
 0x623   : > { %2024 = vmatprep.subr.bf16.mxu0 %v2502_v0  ;;  %v1554_v0 = vld [vmem:[%s3079_s10] sm:$0x1] }
 0x626   : > { %2025 = vmatpush3.bf16.msra.mxu0 %v2206_v47 }
 0x6dc   : > { %v1925_v37 = vpop.f32.mrb[4].mxu0 }
 0x6dd   : > { %v1926_v39 = vpop.f32.mrb[5].mxu0 }
 0x6de   : > { %v1927_v40 = vadd.f32 %v1926_v39, %v1925_v37  ;;  %v1928_v41 = vpop.f32.mrb[6].mxu0 }
 0x6df   : > { %v1929_v42 = vpop.f32.mrb[7].mxu0 }
 0x6e0   : > { %v1424_v43 = vadd.f32 %v1927_v40, %v1292_v38 }
 0x6e2   : > { %v1429_v44 = vmax.f32 %v1424_v43, 0.0 }
 0x6e4   : > { %v1430_v45 = vpack.c.bf16 %v1429_v44, %v1429_v44 }
 0x6e6   : > { %2007 = vmatmul.mubr.bf16.vlgmr.msra.gmra.mrb[20].mxu1 %v1430_v45 }
 0x7b9   : > { %v1530_v49 = vpop.f32.mrb[20].mxu1 }
 0x7ba   : > { %v1531_v50 = vadd.f32 %v1530_v49, %v1447_v48  ;;  %v2008_v51 = vpop.f32.mrb[21].mxu1 }
 0x7bb   : > { %v1533_v52 = vpop.f32.mrb[22].mxu1 }
 0x7bc   : > { %v1536_v53 = vmax.f32 %v1531_v50, 0.0  ;;  %v2009_v54 = vpop.f32.mrb[23].mxu1 }
 0x7be   : > { %v1537_v55 = vpack.c.bf16 %v1536_v53, %v1536_v53 }
 0x7c0   : > { %2027 = vmatmul.mubr.bf16.vlgmr.msra.gmra.mrb[8].mxu0 %v1537_v55 }
 0x893   : > { %v1637_v56 = vpop.f32.mrb[8].mxu0 }
 0x894   : > { %v1638_v57 = vadd.f32 %v1637_v56, %v1554_v0  ;;  %v2028_v58 = vpop.f32.mrb[9].mxu0 }
 0x895   : > { %v1640_v59 = vpop.f32.mrb[10].mxu0 }
 0x896   : > { %1643 = vst [vmem:[%s655_s9] sm:$0x1] %v1638_v57  ;;  %v2029_v60 = vpop.f32.mrb[11].mxu0 }
 0x897   : > { %2420 = shalt.err (!%p2417_p2)
}
 0x898   : > { %s2421_s12 = scalar_lea.hbm %s2968_s2, 16  ;;  %s2425_s16 = scalar_lea.hbm %s3080_s18, 32 }
 0x899   : > { %p2422_p4 = scmp.ne.s32.totalorder %s2968_s2, %s2421_s12  ;;  %p2426_p1 = scmp.lt.u32.totalorder %s2968_s2, %s3080_s18 }
 0x89a   : > { %p2427_p11 = scmp.lt.u32.totalorder %s2425_s16, %s2421_s12  ;;  %p2429_p13 = scmp.lt.u32.totalorder %s2421_s12, %s2968_s2 }
 0x89b   : > { %p2423_p7 = pnand %p2422_p4, %p3081_p6 }
 0x89c   : > { %p2428_p12 = por %p2427_p11, %p2426_p1 }
 0x89d   : > { %p2424_p10 = pneg %p2423_p7 }
 0x89e   : > { %p2430_p9 = por %p2429_p13, %p2428_p12 }
 0x8a0   : > { %p2431_p0 = pnand %p2430_p9, %p2424_p10 }
 0x8a2   : > { %2434 = shalt.err (!%p2431_p0)
}
 0x8a3   : > { %2054 = dma.vmem_to_hbm [thread:$0]  (%p3081_p6), %s2970_s0, 16, %s2968_s2, %s1645_s15  }
 0x8a4 PF: > { %s1669_s9 = sand.u32 1, %s2477_s21   ;;  %p3082_p5 = scmp.ne.s32.totalorder %s3062_s19, 0 }
 0x8a5   : > { %p3083_p3 = scmp.ge.s32.totalorder %s2489_s24, 2  ;;  %s1670_s13 = scalar_lea.sflag [#allocation4], %s1669_s9 }
 0x8a7   : > { %p2080_p8 = pnand %p3083_p3, %p3082_p5 }
 0x8a9   : > { %2472 = dma.done.wait (!%p2080_p8), %s1670_s13, 16  }
 0x8aa   : > { %2474 = vsyncadd (!%p2080_p8), %s1670_s13, 4294967280  ;;  %p34_p2 = scmp.ge.s32.totalorder %s2757_s29, 4   ;;  %s3084_s21 = smov %s2481_s22 }
 0x8ab   : > { %s3085_s22 = smov %s2485_s23  ;;  %s3086_s23 = smov %s2769_s7 }
 0x8ac   : > { %s3087_s24 = smov %s2757_s29  ;;  %36 = sbr.rel (!%p34_p2) target bundleno = 22 (0x16), region = 165 }
 0x8b3   :  { %1674 = vsyncpa [#allocation3], 1 }
 0x8b4   :  { %1676 = vsyncpa [#allocation3 + $0x1], 1 }
 0x8b5   :  { %1677 = vsyncpa [#allocation6], 1 }
 0x8b6   :  { %1679 = vsyncpa [#allocation6 + $0x1], 1 }
 0x8b7   :  { %1680 = vsyncpa [#allocation9], 1 }
 0x8b8   :  { %1681 = vsyncpa [#allocation12], 1 }
 0x8b9   :  { %1682 = vsyncpa [#allocation4], 1 }
 0x8ba   :  { %1684 = vsyncpa [#allocation4 + $0x1], 1 }

</bundles_post_ra>
